<compile_context>
chip_gen: v6e
topology: v6e:2x2x1
jax: 0.10.0
libtpu: 0.0.40
codegen_flags: <defaults>
</compile_context>

<pallas_src>
import jax
import jax.numpy as jnp
from jax.experimental import pallas as pl
from jax.experimental.pallas import tpu as pltpu

D_IN = 768
D_HID = 192
N_CLASS = 6


def _round_up(a, b):
    return (a + b - 1) // b * b


def han_forward(x, params, *, rows_target=1024):
    """x: [N_sent, 1, 1, W, 768] float32. Returns [1, 6] (== PyTorch x[0][0])."""
    n_sent = int(x.shape[0])
    w_len = int(x.shape[3])
    assert x.shape[1] == 1 and x.shape[2] == 1 and x.shape[4] == D_IN

    # Keep x in its original f32 dtype.  When W is already sublane-aligned the
    # flatten below is a pure metadata reshape (no HBM copy); only odd word
    # counts pay a one-time pad pass.
    w_pad = _round_up(w_len, 8)
    if w_pad == w_len:
        xs_flat = x.reshape(n_sent * w_pad, D_IN)
    else:
        xs = jnp.pad(x[:, 0, 0], ((0, 0), (0, w_pad - w_len), (0, 0)))
        xs_flat = xs.reshape(n_sent * w_pad, D_IN)

    (w1, b1, w2, b2, wa1, ba1, wa2, ba2, wc1, bc1, wc3, bc3) = params
    inv_w = 1.0 / float(w_len)
    inv_n = 1.0 / float(n_sent)

    # 768x192 weights in bf16 for the MXU (f32 accumulation).  The 192->1 score
    # heads stay f32 and run on the VPU; fold the word/sentence means into them
    # (exact rescaling of the Linear), so the kernel never multiplies the wide
    # activations by 1/W or 1/N.
    w1b = w1.astype(jnp.bfloat16)
    wa1b = wa1.astype(jnp.bfloat16)
    wc1b = wc1.astype(jnp.bfloat16)
    w2r = (w2.T * inv_w).astype(jnp.float32)      # [1, 192]
    b2s = (b2 * inv_w).astype(jnp.float32)        # [1, 1]  (SMEM scalar)
    wa2r = (wa2.T * inv_n).astype(jnp.float32)    # [1, 192]
    ba2s = (ba2 * inv_n).astype(jnp.float32)      # [1, 1]  (SMEM scalar)

    # Sentence block size: target ~rows_target flattened rows per grid step.
    sb = min(n_sent, max(1, rows_target // w_pad))
    num_blocks = (n_sent + sb - 1) // sb
    block_rows = sb * w_pad                       # multiple of 8 (w_pad is)
    need_mask = num_blocks * sb > n_sent          # ragged final block

    def kernel(x_ref,
               w1_ref, b1_ref, w2_ref, b2_ref,          # sentence attention
               wa1_ref, ba1_ref, wa2_ref, ba2_ref,      # article attention
               wc1_ref, bc1_ref, wc3_ref, bc3_ref,      # classifier
               out_ref, art_acc):
        i = pl.program_id(0)

        # ---- sentence-level attention: one block of `sb` sentences ----
        xv = x_ref[...]                                          # [R, 768] f32
        h = jnp.dot(xv.astype(jnp.bfloat16), w1_ref[...],
                    preferred_element_type=jnp.float32)
        h = jnp.maximum(h + b1_ref[...], 0.0)                    # [R, 192]
        # dp1: identity at inference.
        # fc_sent_2 (192 -> 1) as a VPU multiply + lane reduction; 1/W folded.
        score = jnp.sum(h * w2_ref[...], axis=-1, keepdims=True) + b2_ref[0, 0]
        weighted = xv * score                                    # [R, 768] f32
        sents = weighted.reshape(sb, w_pad, D_IN).sum(axis=1)    # [sb, 768]

        if need_mask:
            # Zero sentence rows past the true article length.  Out-of-bounds
            # rows of the final block are undefined, so use a select (kills
            # any NaN/Inf) BEFORE the article-score matmul.
            sidx = jax.lax.broadcasted_iota(jnp.int32, (sb, 1), 0) + i * sb
            sents = jnp.where(sidx < n_sent, sents, 0.0)

        # ---- article-level attention: online accumulation ----
        ha = jnp.dot(sents.astype(jnp.bfloat16), wa1_ref[...],
                     preferred_element_type=jnp.float32)
        ha = jnp.maximum(ha + ba1_ref[...], 0.0)                 # [sb, 192]
        # dp2: identity at inference.
        w_art = (jnp.sum(ha * wa2_ref[...], axis=-1, keepdims=True)
                 + ba2_ref[0, 0])                                # [sb, 1], 1/N folded
        block_art = jnp.sum(sents * w_art, axis=0, keepdims=True)  # [1, 768]

        def classifier(art):
            hc = jnp.dot(art.astype(jnp.bfloat16), wc1_ref[...],
                         preferred_element_type=jnp.float32)
            hc = jnp.maximum(hc + bc1_ref[...], 0.0)             # [1, 192]
            # dp3: identity at inference.
            out_ref[...] = (jnp.dot(hc, wc3_ref[...],
                                    preferred_element_type=jnp.float32)
                            + bc3_ref[...])                      # [1, 6]

        if num_blocks == 1:
            # Whole article in one block: no accumulator, no predicates.
            classifier(block_art)
        else:
            @pl.when(i == 0)
            def _():
                art_acc[...] = jnp.zeros_like(art_acc)

            art_acc[...] = art_acc[...] + block_art

            @pl.when(i == num_blocks - 1)
            def _():
                classifier(art_acc[...])

    def vmem_full(a):
        nd = a.ndim
        return pl.BlockSpec(a.shape, lambda i, nd=nd: (0,) * nd)

    def smem_spec():
        return pl.BlockSpec(memory_space=pltpu.MemorySpace.SMEM)

    in_specs = [
        pl.BlockSpec((block_rows, D_IN), lambda i: (i, 0)),
        vmem_full(w1b), vmem_full(b1), vmem_full(w2r), smem_spec(),
        vmem_full(wa1b), vmem_full(ba1), vmem_full(wa2r), smem_spec(),
        vmem_full(wc1b), vmem_full(bc1), vmem_full(wc3), vmem_full(bc3),
    ]

    # VMEM budget: 2x double-buffered x block + f32 intermediates + weights,
    # with headroom; capped below v7x's 64 MiB physical, above v5e's 16 MiB
    # default scoped limit.
    block_bytes = block_rows * D_IN * 4
    vmem_limit = int(min(48 * 2**20, max(24 * 2**20, 6 * block_bytes + 8 * 2**20)))

    cost = pl.CostEstimate(
        flops=2 * n_sent * w_pad * D_IN * D_HID        # fc_sent_1
              + 2 * n_sent * D_IN * D_HID              # fc_art_1
              + 2 * D_IN * D_HID + 2 * D_HID * N_CLASS,
        transcendentals=0,
        bytes_accessed=n_sent * w_pad * D_IN * 4 + 3 * D_IN * D_HID * 2
                       + N_CLASS * 4,
    )

    return pl.pallas_call(
        kernel,
        out_shape=jax.ShapeDtypeStruct((1, N_CLASS), jnp.float32),
        grid_spec=pltpu.PrefetchScalarGridSpec(
            num_scalar_prefetch=0,
            grid=(num_blocks,),
            in_specs=in_specs,
            out_specs=pl.BlockSpec((1, N_CLASS), lambda i: (0, 0)),
            scratch_shapes=[pltpu.VMEM((1, D_IN), jnp.float32)],
        ),
        # "arbitrary": the article accumulator is carried across grid steps.
        compiler_params=pltpu.CompilerParams(
            dimension_semantics=("arbitrary",),
            vmem_limit_bytes=vmem_limit),
        cost_estimate=cost,
    )(xs_flat, w1b, b1, w2r, b2s, wa1b, ba1, wa2r, ba2s, wc1b, bc1, wc3, bc3)


def init_params(key):
    """Deterministic init mimicking PyTorch Linear default (U[-1/sqrt(fan_in), ...])."""
    def linear(k, fan_in, fan_out):
        k1, k2 = jax.random.split(k)
        bound = float(fan_in) ** -0.5
        w = jax.random.uniform(k1, (fan_in, fan_out), jnp.float32, -bound, bound)
        b = jax.random.uniform(k2, (1, fan_out), jnp.float32, -bound, bound)
        return w, b
    ks = jax.random.split(key, 6)
    w1, b1 = linear(ks[0], D_IN, D_HID)       # fc_sent_1
    w2, b2 = linear(ks[1], D_HID, 1)          # fc_sent_2
    wa1, ba1 = linear(ks[2], D_IN, D_HID)     # fc_art_1
    wa2, ba2 = linear(ks[3], D_HID, 1)        # fc_art_2
    wc1, bc1 = linear(ks[4], D_IN, D_HID)     # fc_class_1
    wc3, bc3 = linear(ks[5], D_HID, N_CLASS)  # fc_class_3
    return (w1, b1, w2, b2, wa1, ba1, wa2, ba2, wc1, bc1, wc3, bc3)


def reference(xs, params):
    """Pure-JAX (f32) transcription of the PyTorch forward (inference mode)."""
    (w1, b1, w2, b2, wa1, ba1, wa2, ba2, wc1, bc1, wc3, bc3) = params
    sents = []
    for i in range(xs.shape[0]):
        x = xs[i]
        h = jax.nn.relu(x @ w1 + b1)
        w_sent = h @ w2 + b2
        sents.append(jnp.mean(x * w_sent, axis=0, keepdims=True))
    s = jnp.concatenate(sents, axis=0)
    ha = jax.nn.relu(s @ wa1 + ba1)
    w_art = ha @ wa2 + ba2
    art = jnp.mean(s * w_art, axis=0, keepdims=True)
    hc = jax.nn.relu(art @ wc1 + bc1)
    return hc @ wc3 + bc3


if __name__ == "__main__":
    key = jax.random.PRNGKey(0)
    kx1, kx2, kp = jax.random.split(key, 3)
    params = init_params(kp)

    # Case 1: tiny article -> single block, no masking, unconditional epilogue.
    N1, W1 = 3, 8
    x1 = jax.random.normal(kx1, (N1, 1, 1, W1, D_IN), jnp.float32)
    out1 = jax.block_until_ready(han_forward(x1, params))
    ref1 = reference(x1[:, 0, 0], params)
    assert out1.shape == (1, N_CLASS), out1.shape
    assert jnp.allclose(out1, ref1, rtol=3e-2, atol=2e-2), (out1, ref1)

    # Case 2: multi-block grid with a ragged final block (exercises the online
    # article accumulator, sentence masking and last-step writeback).
    N2, W2 = 37, 8
    x2 = jax.random.normal(kx2, (N2, 1, 1, W2, D_IN), jnp.float32)
    out2 = jax.block_until_ready(han_forward(x2, params, rows_target=128))
    ref2 = reference(x2[:, 0, 0], params)
    assert out2.shape == (1, N_CLASS), out2.shape
    assert jnp.allclose(out2, ref2, rtol=3e-2, atol=2e-2), (out2, ref2)

    print("KERNEL_OK")
</pallas_src>

<mosaic_0001>
module attributes {stable_mosaic.version = 11 : i64} {
  func.func @kernel(%arg0: i32, %arg1: memref<24x768xf32, #tpu.memory_space<vmem>>, %arg2: memref<768x192xbf16, #tpu.memory_space<vmem>>, %arg3: memref<1x192xf32, #tpu.memory_space<vmem>>, %arg4: memref<1x192xf32, #tpu.memory_space<vmem>>, %arg5: memref<1x1xf32, #tpu.memory_space<smem>>, %arg6: memref<768x192xbf16, #tpu.memory_space<vmem>>, %arg7: memref<1x192xf32, #tpu.memory_space<vmem>>, %arg8: memref<1x192xf32, #tpu.memory_space<vmem>>, %arg9: memref<1x1xf32, #tpu.memory_space<smem>>, %arg10: memref<768x192xbf16, #tpu.memory_space<vmem>>, %arg11: memref<1x192xf32, #tpu.memory_space<vmem>>, %arg12: memref<192x6xf32, #tpu.memory_space<vmem>>, %arg13: memref<1x6xf32, #tpu.memory_space<vmem>>, %arg14: memref<1x6xf32, #tpu.memory_space<vmem>>, %arg15: memref<1x768xf32, #tpu.memory_space<vmem>>) attributes {dimension_semantics = [#tpu.dimension_semantics<arbitrary>], iteration_bounds = array<i64: 1>, scalar_prefetch = 0 : i64, scratch_operands = 1 : i64, tpu.core_type = #tpu.core_type<tc>, window_params = [{transform_indices = @transform_0, window_bounds = array<i64: 24, 768>}, {pipeline_mode = #tpu.pipeline_mode<synchronous>, transform_indices = @transform_1, window_bounds = array<i64: 768, 192>}, {pipeline_mode = #tpu.pipeline_mode<synchronous>, transform_indices = @transform_2, window_bounds = array<i64: 1, 192>}, {pipeline_mode = #tpu.pipeline_mode<synchronous>, transform_indices = @transform_3, window_bounds = array<i64: 1, 192>}, {transform_indices = @transform_4, window_bounds = array<i64: 1, 1>}, {pipeline_mode = #tpu.pipeline_mode<synchronous>, transform_indices = @transform_5, window_bounds = array<i64: 768, 192>}, {pipeline_mode = #tpu.pipeline_mode<synchronous>, transform_indices = @transform_6, window_bounds = array<i64: 1, 192>}, {pipeline_mode = #tpu.pipeline_mode<synchronous>, transform_indices = @transform_7, window_bounds = array<i64: 1, 192>}, {transform_indices = @transform_8, window_bounds = array<i64: 1, 1>}, {pipeline_mode = #tpu.pipeline_mode<synchronous>, transform_indices = @transform_9, window_bounds = array<i64: 768, 192>}, {pipeline_mode = #tpu.pipeline_mode<synchronous>, transform_indices = @transform_10, window_bounds = array<i64: 1, 192>}, {pipeline_mode = #tpu.pipeline_mode<synchronous>, transform_indices = @transform_11, window_bounds = array<i64: 192, 6>}, {pipeline_mode = #tpu.pipeline_mode<synchronous>, transform_indices = @transform_12, window_bounds = array<i64: 1, 6>}, {pipeline_mode = #tpu.pipeline_mode<synchronous>, transform_indices = @transform_13, window_bounds = array<i64: 1, 6>}]} {
    %c0 = arith.constant 0 : index
    %c0_0 = arith.constant 0 : index
    %0 = vector.load %arg1[%c0, %c0_0] : memref<24x768xf32, #tpu.memory_space<vmem>>, vector<24x768xf32>
    %1 = arith.truncf %0 : vector<24x768xf32> to vector<24x768xbf16>
    %c0_1 = arith.constant 0 : index
    %c0_2 = arith.constant 0 : index
    %2 = vector.load %arg2[%c0_1, %c0_2] : memref<768x192xbf16, #tpu.memory_space<vmem>>, vector<768x192xbf16>
    %cst = arith.constant dense<0.000000e+00> : vector<24x192xf32>
    %3 = tpu.matmul %1, %2, %cst {dimension_numbers = #tpu.dot_dimension_numbers<[1], [0], [0], [1], [0, 0, 1, 1], [], []>} : vector<24x768xbf16>, vector<768x192xbf16>, vector<24x192xf32> -> vector<24x192xf32>
    %c0_3 = arith.constant 0 : index
    %c0_4 = arith.constant 0 : index
    %4 = vector.load %arg3[%c0_3, %c0_4] : memref<1x192xf32, #tpu.memory_space<vmem>>, vector<1x192xf32>
    %5 = vector.broadcast %4 : vector<1x192xf32> to vector<24x192xf32>
    %6 = arith.addf %3, %5 : vector<24x192xf32>
    %cst_5 = arith.constant 0.000000e+00 : f32
    %7 = vector.broadcast %cst_5 : f32 to vector<24x192xf32>
    %8 = arith.maximumf %6, %7 : vector<24x192xf32>
    %c0_6 = arith.constant 0 : index
    %c0_7 = arith.constant 0 : index
    %9 = vector.load %arg4[%c0_6, %c0_7] : memref<1x192xf32, #tpu.memory_space<vmem>>, vector<1x192xf32>
    %10 = vector.broadcast %9 : vector<1x192xf32> to vector<24x192xf32>
    %11 = arith.mulf %8, %10 : vector<24x192xf32>
    %cst_8 = arith.constant dense<0.000000e+00> : vector<24xf32>
    %12 = vector.multi_reduction <add>, %11, %cst_8 [1] : vector<24x192xf32> to vector<24xf32>
    %13 = vector.shape_cast %12 : vector<24xf32> to vector<24x1xf32>
    %c0_9 = arith.constant 0 : index
    %c0_10 = arith.constant 0 : index
    %14 = memref.load %arg5[%c0_9, %c0_10] : memref<1x1xf32, #tpu.memory_space<smem>>
    %15 = vector.broadcast %14 : f32 to vector<24x1xf32>
    %16 = arith.addf %13, %15 : vector<24x1xf32>
    %17 = vector.broadcast %16 : vector<24x1xf32> to vector<24x768xf32>
    %18 = arith.mulf %0, %17 : vector<24x768xf32>
    %19 = vector.shape_cast %18 : vector<24x768xf32> to vector<3x8x768xf32>
    %cst_11 = arith.constant dense<0.000000e+00> : vector<3x768xf32>
    %20 = vector.multi_reduction <add>, %19, %cst_11 [1] : vector<3x8x768xf32> to vector<3x768xf32>
    %21 = arith.truncf %20 : vector<3x768xf32> to vector<3x768xbf16>
    %c0_12 = arith.constant 0 : index
    %c0_13 = arith.constant 0 : index
    %22 = vector.load %arg6[%c0_12, %c0_13] : memref<768x192xbf16, #tpu.memory_space<vmem>>, vector<768x192xbf16>
    %cst_14 = arith.constant dense<0.000000e+00> : vector<3x192xf32>
    %23 = tpu.matmul %21, %22, %cst_14 {dimension_numbers = #tpu.dot_dimension_numbers<[1], [0], [0], [1], [0, 0, 1, 1], [], []>} : vector<3x768xbf16>, vector<768x192xbf16>, vector<3x192xf32> -> vector<3x192xf32>
    %c0_15 = arith.constant 0 : index
    %c0_16 = arith.constant 0 : index
    %24 = vector.load %arg7[%c0_15, %c0_16] : memref<1x192xf32, #tpu.memory_space<vmem>>, vector<1x192xf32>
    %25 = vector.broadcast %24 : vector<1x192xf32> to vector<3x192xf32>
    %26 = arith.addf %23, %25 : vector<3x192xf32>
    %cst_17 = arith.constant 0.000000e+00 : f32
    %27 = vector.broadcast %cst_17 : f32 to vector<3x192xf32>
    %28 = arith.maximumf %26, %27 : vector<3x192xf32>
    %c0_18 = arith.constant 0 : index
    %c0_19 = arith.constant 0 : index
    %29 = vector.load %arg8[%c0_18, %c0_19] : memref<1x192xf32, #tpu.memory_space<vmem>>, vector<1x192xf32>
    %30 = vector.broadcast %29 : vector<1x192xf32> to vector<3x192xf32>
    %31 = arith.mulf %28, %30 : vector<3x192xf32>
    %cst_20 = arith.constant dense<0.000000e+00> : vector<3xf32>
    %32 = vector.multi_reduction <add>, %31, %cst_20 [1] : vector<3x192xf32> to vector<3xf32>
    %33 = vector.shape_cast %32 : vector<3xf32> to vector<3x1xf32>
    %c0_21 = arith.constant 0 : index
    %c0_22 = arith.constant 0 : index
    %34 = memref.load %arg9[%c0_21, %c0_22] : memref<1x1xf32, #tpu.memory_space<smem>>
    %35 = vector.broadcast %34 : f32 to vector<3x1xf32>
    %36 = arith.addf %33, %35 : vector<3x1xf32>
    %37 = vector.broadcast %36 : vector<3x1xf32> to vector<3x768xf32>
    %38 = arith.mulf %20, %37 : vector<3x768xf32>
    %cst_23 = arith.constant dense<0.000000e+00> : vector<768xf32>
    %39 = vector.multi_reduction <add>, %38, %cst_23 [0] : vector<3x768xf32> to vector<768xf32>
    %40 = vector.shape_cast %39 : vector<768xf32> to vector<1x768xf32>
    %41 = arith.truncf %40 : vector<1x768xf32> to vector<1x768xbf16>
    %c0_24 = arith.constant 0 : index
    %c0_25 = arith.constant 0 : index
    %42 = vector.load %arg10[%c0_24, %c0_25] : memref<768x192xbf16, #tpu.memory_space<vmem>>, vector<768x192xbf16>
    %cst_26 = arith.constant dense<0.000000e+00> : vector<1x192xf32>
    %43 = tpu.matmul %41, %42, %cst_26 {dimension_numbers = #tpu.dot_dimension_numbers<[1], [0], [0], [1], [0, 0, 1, 1], [], []>} : vector<1x768xbf16>, vector<768x192xbf16>, vector<1x192xf32> -> vector<1x192xf32>
    %c0_27 = arith.constant 0 : index
    %c0_28 = arith.constant 0 : index
    %44 = vector.load %arg11[%c0_27, %c0_28] : memref<1x192xf32, #tpu.memory_space<vmem>>, vector<1x192xf32>
    %45 = arith.addf %43, %44 : vector<1x192xf32>
    %cst_29 = arith.constant 0.000000e+00 : f32
    %46 = vector.broadcast %cst_29 : f32 to vector<1x192xf32>
    %47 = arith.maximumf %45, %46 : vector<1x192xf32>
    %c0_30 = arith.constant 0 : index
    %c0_31 = arith.constant 0 : index
    %48 = vector.load %arg12[%c0_30, %c0_31] : memref<192x6xf32, #tpu.memory_space<vmem>>, vector<192x6xf32>
    %cst_32 = arith.constant dense<0.000000e+00> : vector<1x6xf32>
    %49 = tpu.matmul %47, %48, %cst_32 {dimension_numbers = #tpu.dot_dimension_numbers<[1], [0], [0], [1], [0, 0, 1, 1], [], []>} : vector<1x192xf32>, vector<192x6xf32>, vector<1x6xf32> -> vector<1x6xf32>
    %c0_33 = arith.constant 0 : index
    %c0_34 = arith.constant 0 : index
    %50 = vector.load %arg13[%c0_33, %c0_34] : memref<1x6xf32, #tpu.memory_space<vmem>>, vector<1x6xf32>
    %51 = arith.addf %49, %50 : vector<1x6xf32>
    %c0_35 = arith.constant 0 : index
    %c0_36 = arith.constant 0 : index
    %52 = vector.load %arg14[%c0_35, %c0_36] : memref<1x6xf32, #tpu.memory_space<vmem>>, vector<1x6xf32>
    tpu.vector_store %arg14[%c0_35, %c0_36], %51 {strides = array<i32>} : memref<1x6xf32, #tpu.memory_space<vmem>>, vector<1x6xf32>,
    return
  }
  func.func @transform_0(%arg0: i32) -> (i32, i32) {
    %c0_i32 = arith.constant 0 : i32
    %c0_i32_0 = arith.constant 0 : i32
    return %arg0, %c0_i32 : i32, i32
  }
  func.func @transform_1(%arg0: i32) -> (i32, i32) {
    %c0_i32 = arith.constant 0 : i32
    %c0_i32_0 = arith.constant 0 : i32
    %c0_i32_1 = arith.constant 0 : i32
    return %c0_i32, %c0_i32_0 : i32, i32
  }
  func.func @transform_2(%arg0: i32) -> (i32, i32) {
    %c0_i32 = arith.constant 0 : i32
    %c0_i32_0 = arith.constant 0 : i32
    %c0_i32_1 = arith.constant 0 : i32
    return %c0_i32, %c0_i32_0 : i32, i32
  }
  func.func @transform_3(%arg0: i32) -> (i32, i32) {
    %c0_i32 = arith.constant 0 : i32
    %c0_i32_0 = arith.constant 0 : i32
    %c0_i32_1 = arith.constant 0 : i32
    return %c0_i32, %c0_i32_0 : i32, i32
  }
  func.func @transform_4(%arg0: i32) -> (i32, i32) {
    %c0_i32 = arith.constant 0 : i32
    %c0_i32_0 = arith.constant 0 : i32
    %c0_i32_1 = arith.constant 0 : i32
    return %c0_i32, %c0_i32_0 : i32, i32
  }
  func.func @transform_5(%arg0: i32) -> (i32, i32) {
    %c0_i32 = arith.constant 0 : i32
    %c0_i32_0 = arith.constant 0 : i32
    %c0_i32_1 = arith.constant 0 : i32
    return %c0_i32, %c0_i32_0 : i32, i32
  }
  func.func @transform_6(%arg0: i32) -> (i32, i32) {
    %c0_i32 = arith.constant 0 : i32
    %c0_i32_0 = arith.constant 0 : i32
    %c0_i32_1 = arith.constant 0 : i32
    return %c0_i32, %c0_i32_0 : i32, i32
  }
  func.func @transform_7(%arg0: i32) -> (i32, i32) {
    %c0_i32 = arith.constant 0 : i32
    %c0_i32_0 = arith.constant 0 : i32
    %c0_i32_1 = arith.constant 0 : i32
    return %c0_i32, %c0_i32_0 : i32, i32
  }
  func.func @transform_8(%arg0: i32) -> (i32, i32) {
    %c0_i32 = arith.constant 0 : i32
    %c0_i32_0 = arith.constant 0 : i32
    %c0_i32_1 = arith.constant 0 : i32
    return %c0_i32, %c0_i32_0 : i32, i32
  }
  func.func @transform_9(%arg0: i32) -> (i32, i32) {
    %c0_i32 = arith.constant 0 : i32
    %c0_i32_0 = arith.constant 0 : i32
    %c0_i32_1 = arith.constant 0 : i32
    return %c0_i32, %c0_i32_0 : i32, i32
  }
  func.func @transform_10(%arg0: i32) -> (i32, i32) {
    %c0_i32 = arith.constant 0 : i32
    %c0_i32_0 = arith.constant 0 : i32
    %c0_i32_1 = arith.constant 0 : i32
    return %c0_i32, %c0_i32_0 : i32, i32
  }
  func.func @transform_11(%arg0: i32) -> (i32, i32) {
    %c0_i32 = arith.constant 0 : i32
    %c0_i32_0 = arith.constant 0 : i32
    %c0_i32_1 = arith.constant 0 : i32
    return %c0_i32, %c0_i32_0 : i32, i32
  }
  func.func @transform_12(%arg0: i32) -> (i32, i32) {
    %c0_i32 = arith.constant 0 : i32
    %c0_i32_0 = arith.constant 0 : i32
    %c0_i32_1 = arith.constant 0 : i32
    return %c0_i32, %c0_i32_0 : i32, i32
  }
  func.func @transform_13(%arg0: i32) -> (i32, i32) {
    %c0_i32 = arith.constant 0 : i32
    %c0_i32_0 = arith.constant 0 : i32
    %c0_i32_1 = arith.constant 0 : i32
    return %c0_i32, %c0_i32_0 : i32, i32
  }
}

</mosaic_0001>

<bundles_post_ra>
// kernel: tpu_custom_call.1
= control target key start
LH: loop header
LB: loop body
LE: loop exit
PB: predicated region body
PF: predicated region fallthrough
CT: control target
= control target key end

     0   :  { %s4869_s0 = inlined_call_operand.vmem [shape: f32[24,768], index: 0, kind: input, shape index: {}]   ;;  %s4870_s1 = inlined_call_operand.vmem [shape: bf16[768,192], index: 1, kind: input, shape index: {}]   ;;  %s4871_s2 = inlined_call_operand.vmem [shape: f32[1,192], index: 2, kind: input, shape index: {}]   ;;  %s4872_s3 = inlined_call_operand.vmem [shape: f32[1,192], index: 3, kind: input, shape index: {}]   ;;  %s4873_s4 = inlined_call_operand.<no memory space> [shape: f32[1,1], index: 4, kind: input, shape index: {}]   ;;  %s4874_s5 = inlined_call_operand.vmem [shape: bf16[768,192], index: 5, kind: input, shape index: {}]   ;;  %s4875_s6 = inlined_call_operand.vmem [shape: f32[1,192], index: 6, kind: input, shape index: {}]   ;;  %s4876_s7 = inlined_call_operand.vmem [shape: f32[1,192], index: 7, kind: input, shape index: {}]   ;;  %s4877_s8 = inlined_call_operand.<no memory space> [shape: f32[1,1], index: 8, kind: input, shape index: {}]   ;;  %s4878_s9 = inlined_call_operand.vmem [shape: bf16[768,192], index: 9, kind: input, shape index: {}]   ;;  %s4879_s10 = inlined_call_operand.vmem [shape: f32[1,192], index: 10, kind: input, shape index: {}]   ;;  %s4880_s11 = inlined_call_operand.vmem [shape: f32[192,6], index: 11, kind: input, shape index: {}]   ;;  %s4881_s12 = inlined_call_operand.vmem [shape: f32[1,6], index: 12, kind: input, shape index: {}]   ;;  %s4882_s13 = inlined_call_operand.hbm [shape: f32[1,6], index: 13, kind: output, shape index: {}]  }
   0x1   :  { %v3041_v0 = vld [vmem:[%s4870_s1 + $0x74] ss:$8 sps:$4 sm:$0xff]   ;;  %v3043_v1 = vld [vmem:[%s4870_s1 + $0x70] ss:$8 sps:$4 sm:$0xff]   ;;  %v3047_v4 = vld [vmem:[%s4870_s1 + $0x64] ss:$8 sps:$4 sm:$0xff]  }
   0x2   :  { %665 = vmatprep.subr.bf16.mxu0 %v3041_v0  ;;  %v3044_v2 = vld [vmem:[%s4870_s1 + $0x174] ss:$8 sps:$4 sm:$0xff]   ;;  %v3046_v3 = vld [vmem:[%s4870_s1 + $0x170] ss:$8 sps:$4 sm:$0xff]   ;;  %v3049_v5 = vld [vmem:[%s4870_s1 + $0x60] ss:$8 sps:$4 sm:$0xff]  }
   0x3   :  { %666 = vmatpush1.bf16.msra.mxu0 %v3043_v1  ;;  %716 = vmatprep.subr.bf16.mxu1 %v3044_v2  ;;  %v3050_v6 = vld [vmem:[%s4870_s1 + $0x164] ss:$8 sps:$4 sm:$0xff]   ;;  %v3052_v7 = vld [vmem:[%s4870_s1 + $0x160] ss:$8 sps:$4 sm:$0xff]   ;;  %v3053_v8 = vld [vmem:[%s4870_s1 + $0x54] ss:$8 sps:$4 sm:$0xff]  }
   0x4   :  { %717 = vmatpush1.bf16.msra.mxu1 %v3046_v3  ;;  %667 = vmatprep.subr.bf16.mxu0 %v3047_v4  ;;  %v3055_v9 = vld [vmem:[%s4870_s1 + $0x50] ss:$8 sps:$4 sm:$0xff]   ;;  %v3056_v10 = vld [vmem:[%s4870_s1 + $0x154] ss:$8 sps:$4 sm:$0xff]   ;;  %v3059_v11 = vld [vmem:[%s4870_s1 + $0x44] ss:$8 sps:$4 sm:$0xff]  }
   0x5   :  { %718 = vmatprep.subr.bf16.mxu1 %v3050_v6  ;;  %v3058_v12 = vld [vmem:[%s4870_s1 + $0x150] ss:$8 sps:$4 sm:$0xff]   ;;  %v3062_v13 = vld [vmem:[%s4870_s1 + $0x144] ss:$8 sps:$4 sm:$0xff]   ;;  %v3061_v14 = vld [vmem:[%s4870_s1 + $0x40] ss:$8 sps:$4 sm:$0xff]  }
   0x6   :  { %v3065_v15 = vld [vmem:[%s4870_s1 + $0x34] ss:$8 sps:$4 sm:$0xff]   ;;  %v3064_v16 = vld [vmem:[%s4870_s1 + $0x140] ss:$8 sps:$4 sm:$0xff]   ;;  %v3067_v18 = vld [vmem:[%s4870_s1 + $0x30] ss:$8 sps:$4 sm:$0xff]  }
   0x7   :  { %668 = vmatpush1.bf16.msra.mxu0 %v3049_v5  ;;  %v3068_v17 = vld [vmem:[%s4870_s1 + $0x134] ss:$8 sps:$4 sm:$0xff]   ;;  %v3071_v19 = vld [vmem:[%s4870_s1 + $0x24] ss:$8 sps:$4 sm:$0xff]   ;;  %v3070_v20 = vld [vmem:[%s4870_s1 + $0x130] ss:$8 sps:$4 sm:$0xff]  }
   0x8   :  { %669 = vmatprep.subr.bf16.mxu0 %v3053_v8  ;;  %719 = vmatpush1.bf16.msra.mxu1 %v3052_v7  ;;  %v3074_v21 = vld [vmem:[%s4870_s1 + $0x124] ss:$8 sps:$4 sm:$0xff]   ;;  %v3073_v22 = vld [vmem:[%s4870_s1 + $0x20] ss:$8 sps:$4 sm:$0xff]   ;;  %v3077_v23 = vld [vmem:[%s4870_s1 + $0x14] ss:$8 sps:$4 sm:$0xff]  }
   0x9   :  { %720 = vmatprep.subr.bf16.mxu1 %v3056_v10  ;;  %v3076_v24 = vld [vmem:[%s4870_s1 + $0x120] ss:$8 sps:$4 sm:$0xff]   ;;  %v3080_v25 = vld [vmem:[%s4870_s1 + $0x114] ss:$8 sps:$4 sm:$0xff]   ;;  %v3079_v26 = vld [vmem:[%s4870_s1 + $0x10] ss:$8 sps:$4 sm:$0xff]  }
   0xa   :  { %v3083_v27 = vld [vmem:[%s4870_s1 + $0x4] ss:$8 sps:$4 sm:$0xff]   ;;  %v3082_v28 = vld [vmem:[%s4870_s1 + $0x110] ss:$8 sps:$4 sm:$0xff]   ;;  %v3085_v30 = vld [vmem:[%s4870_s1] ss:$8 sps:$4 sm:$0xff]  }
   0xb   :  { %670 = vmatpush1.bf16.msra.mxu0 %v3055_v9  ;;  %v3086_v29 = vld [vmem:[%s4870_s1 + $0x104] ss:$8 sps:$4 sm:$0xff]   ;;  %v3089_v31 = vld [vmem:[%s4870_s1 + $0xf4] ss:$8 sps:$4 sm:$0xff]   ;;  %v3088_v32 = vld [vmem:[%s4870_s1 + $0x100] ss:$8 sps:$4 sm:$0xff]  }
   0xc   :  { %671 = vmatprep.subr.bf16.mxu0 %v3059_v11  ;;  %721 = vmatpush1.bf16.msra.mxu1 %v3058_v12  ;;  %v3092_v33 = vld [vmem:[%s4870_s1 + $0x1f4] ss:$8 sps:$4 sm:$0xff]   ;;  %v3091_v34 = vld [vmem:[%s4870_s1 + $0xf0] ss:$8 sps:$4 sm:$0xff]   ;;  %v3095_v35 = vld [vmem:[%s4870_s1 + $0xe4] ss:$8 sps:$4 sm:$0xff]  }
   0xd   :  { %722 = vmatprep.subr.bf16.mxu1 %v3062_v13  ;;  %v3094_v36 = vld [vmem:[%s4870_s1 + $0x1f0] ss:$8 sps:$4 sm:$0xff]   ;;  %v3098_v37 = vld [vmem:[%s4870_s1 + $0x1e4] ss:$8 sps:$4 sm:$0xff]   ;;  %v3097_v38 = vld [vmem:[%s4870_s1 + $0xe0] ss:$8 sps:$4 sm:$0xff]  }
   0xe   :  { %v3101_v39 = vld [vmem:[%s4870_s1 + $0xd4] ss:$8 sps:$4 sm:$0xff]   ;;  %v3100_v40 = vld [vmem:[%s4870_s1 + $0x1e0] ss:$8 sps:$4 sm:$0xff]   ;;  %v3103_v42 = vld [vmem:[%s4870_s1 + $0xd0] ss:$8 sps:$4 sm:$0xff]  }
   0xf   :  { %672 = vmatpush1.bf16.msra.mxu0 %v3061_v14  ;;  %v3104_v41 = vld [vmem:[%s4870_s1 + $0x1d4] ss:$8 sps:$4 sm:$0xff]   ;;  %v3107_v43 = vld [vmem:[%s4870_s1 + $0xc4] ss:$8 sps:$4 sm:$0xff]   ;;  %v3106_v44 = vld [vmem:[%s4870_s1 + $0x1d0] ss:$8 sps:$4 sm:$0xff]  }
  0x10   :  { %673 = vmatprep.subr.bf16.mxu0 %v3065_v15  ;;  %723 = vmatpush1.bf16.msra.mxu1 %v3064_v16  ;;  %v3110_v45 = vld [vmem:[%s4870_s1 + $0x1c4] ss:$8 sps:$4 sm:$0xff]   ;;  %v54_v47 = vld [vmem:[%s4869_s0 + $0x38] sm:$0xff]  ;;  %v3109_v48 = vld [vmem:[%s4870_s1 + $0xc0] ss:$8 sps:$4 sm:$0xff]  }
  0x11   :  { %724 = vmatprep.subr.bf16.mxu1 %v3068_v17  ;;  %v48_v46 = vld [vmem:[%s4869_s0 + $0x8] sm:$0xff]  ;;  %v3113_v50 = vld [vmem:[%s4870_s1 + $0xb4] ss:$8 sps:$4 sm:$0xff]   ;;  %v3115_v56 = vld [vmem:[%s4870_s1 + $0xb0] ss:$8 sps:$4 sm:$0xff]  }
  0x12   :  { %v66_v49 = vpack.c.bf16 %v54_v47, %v48_v46  ;;  %v3112_v51 = vld [vmem:[%s4870_s1 + $0x1c0] ss:$8 sps:$4 sm:$0xff]   ;;  %v50_v52 = vld [vmem:[%s4869_s0 + $0x18] sm:$0xff]  ;;  %v3119_v57 = vld [vmem:[%s4870_s1 + $0xa4] ss:$8 sps:$4 sm:$0xff]  }
  0x13   :  { %674 = vmatpush1.bf16.msra.mxu0 %v3067_v18  ;;  %v56_v53 = vld [vmem:[%s4869_s0 + $0x48] sm:$0xff]  ;;  %v3116_v54 = vld [vmem:[%s4870_s1 + $0x1b4] ss:$8 sps:$4 sm:$0xff]   ;;  %v3118_v58 = vld [vmem:[%s4870_s1 + $0x1b0] ss:$8 sps:$4 sm:$0xff]  }
  0x14   :  { %675 = vmatprep.subr.bf16.mxu0 %v3071_v19  ;;  %725 = vmatpush1.bf16.msra.mxu1 %v3070_v20  ;;  %v68_v55 = vpack.c.bf16 %v56_v53, %v50_v52  ;;  %v3122_v59 = vld [vmem:[%s4870_s1 + $0x1a4] ss:$8 sps:$4 sm:$0xff]   ;;  %v3121_v60 = vld [vmem:[%s4870_s1 + $0xa0] ss:$8 sps:$4 sm:$0xff]   ;;  %v3125_v61 = vld [vmem:[%s4870_s1 + $0x94] ss:$8 sps:$4 sm:$0xff]  }
  0x15   :  { %726 = vmatprep.subr.bf16.mxu1 %v3074_v21  ;;  %697 = vmatprep.mubr.bf16.mxu0 %v66_v49  ;;  %v3124_v62 = vld [vmem:[%s4870_s1 + $0x1a0] ss:$8 sps:$4 sm:$0xff]   ;;  %v3128_v63 = vld [vmem:[%s4870_s1 + $0x194] ss:$8 sps:$4 sm:$0xff]   ;;  %v3127_v0 = vld [vmem:[%s4870_s1 + $0x90] ss:$8 sps:$4 sm:$0xff]  }
  0x16   :  { %748 = vmatprep.mubr.bf16.mxu1 %v68_v55  ;;  %v3130_v1 = vld [vmem:[%s4870_s1 + $0x190] ss:$8 sps:$4 sm:$0xff]   ;;  %v3131_v2 = vld [vmem:[%s4870_s1 + $0x84] ss:$8 sps:$4 sm:$0xff]   ;;  %v3133_v3 = vld [vmem:[%s4870_s1 + $0x80] ss:$8 sps:$4 sm:$0xff]  }
  0x17   :  { %676 = vmatpush1.bf16.msra.mxu0 %v3073_v22  ;;  %v3134_v4 = vld [vmem:[%s4870_s1 + $0x184] ss:$8 sps:$4 sm:$0xff]   ;;  %v3136_v6 = vld [vmem:[%s4870_s1 + $0x180] ss:$8 sps:$4 sm:$0xff]   ;;  %v53_v7 = vld [vmem:[%s4869_s0 + $0x30] sm:$0xff] }
  0x18   :  { %677 = vmatprep.subr.bf16.mxu0 %v3077_v23  ;;  %727 = vmatpush1.bf16.msra.mxu1 %v3076_v24  ;;  %v47_v5 = vld [vmem:[%s4869_s0] sm:$0xff]  ;;  %v3139_v8 = vld [vmem:[%s4870_s1 + $0x274] ss:$8 sps:$4 sm:$0xff]   ;;  %v60_v12 = vld [vmem:[%s4869_s0 + $0x68] sm:$0xff] }
  0x19   :  { %728 = vmatprep.subr.bf16.mxu1 %v3080_v25  ;;  %v3792_v9 = vld [vmem:[%s4869_s0 + $0x10] sm:$0xff]  ;;  %v55_v10 = vld [vmem:[%s4869_s0 + $0x40] sm:$0xff]  ;;  %v65_v11 = vpack.c.bf16 %v53_v7, %v47_v5  ;;  %v72_v14 = vpack.c.bf16 %v60_v12, %v60_v12  ;;  %v62_v17 = vld [vmem:[%s4869_s0 + $0x78] sm:$0xff] }
  0x1a   :  { %v3137_v13 = vld [vmem:[%s4870_s1 + $0x270] ss:$8 sps:$4 sm:$0xff]   ;;  %v67_v15 = vpack.c.bf16 %v55_v10, %v3792_v9  ;;  %v3142_v16 = vld [vmem:[%s4870_s1 + $0x264] ss:$8 sps:$4 sm:$0xff]   ;;  %v74_v18 = vpack.c.bf16 %v62_v17, %v62_v17  ;;  %v3140_v19 = vld [vmem:[%s4870_s1 + $0x260] ss:$8 sps:$4 sm:$0xff]  }
  0x1b   :  { %678 = vmatpush1.bf16.msra.mxu0 %v3079_v26  ;;  %v3816_v20 = vld [vmem:[%s4869_s0 + $0x60] sm:$0xff]  ;;  %v3145_v21 = vld [vmem:[%s4870_s1 + $0x254] ss:$8 sps:$4 sm:$0xff]   ;;  %v3824_v22 = vld [vmem:[%s4869_s0 + $0x28] sm:$0xff] }
  0x1c   :  { %679 = vmatprep.subr.bf16.mxu0 %v3083_v27  ;;  %729 = vmatpush1.bf16.msra.mxu1 %v3082_v28  ;;  %v3829_v23 = vld [vmem:[%s4869_s0 + $0x58] sm:$0xff]  ;;  %v3837_v25 = vld [vmem:[%s4869_s0 + $0x70] sm:$0xff]  ;;  %v3148_v26 = vld [vmem:[%s4870_s1 + $0x244] ss:$8 sps:$4 sm:$0xff]   ;;  %v71_v27 = vpack.c.bf16 %v3816_v20, %v3816_v20 }
  0x1d   :  { %730 = vmatprep.subr.bf16.mxu1 %v3086_v29  ;;  %v3143_v24 = vld [vmem:[%s4870_s1 + $0x250] ss:$8 sps:$4 sm:$0xff]   ;;  %v70_v28 = vpack.c.bf16 %v3829_v23, %v3824_v22  ;;  %v73_v29 = vpack.c.bf16 %v3837_v25, %v3837_v25  ;;  %v3170_v46 = vld [vmem:[%s4870_s1 + $0x2c0] ss:$8 sps:$4 sm:$0xff]   ;;  %v3175_v47 = vld [vmem:[%s4870_s1 + $0x2b4] ss:$8 sps:$4 sm:$0xff]  }
  0x1e   :  { %v3178_v49 = vld [vmem:[%s4870_s1 + $0x2a4] ss:$8 sps:$4 sm:$0xff]   ;;  %v3179_v52 = vld [vmem:[%s4870_s1 + $0x290] ss:$8 sps:$4 sm:$0xff]  }
  0x1f   :  { %680 = vmatpush1.bf16.msra.mxu0 %v3085_v30  ;;  %v3146_v30 = vld [vmem:[%s4870_s1 + $0x240] ss:$8 sps:$4 sm:$0xff]   ;;  %v3184_v53 = vld [vmem:[%s4870_s1 + $0x284] ss:$8 sps:$4 sm:$0xff]  }
  0x20   :  { %681 = vmatprep.subr.bf16.mxu0 %v3089_v31  ;;  %731 = vmatpush1.bf16.msra.mxu1 %v3088_v32  ;;  %v3151_v31 = vld [vmem:[%s4870_s1 + $0x234] ss:$8 sps:$4 sm:$0xff]   ;;  %v3149_v32 = vld [vmem:[%s4870_s1 + $0x230] ss:$8 sps:$4 sm:$0xff]   ;;  %v3926_v55 = vld [vmem:[%s4869_s0 + $0x20] sm:$0xff] }
  0x21   :  { %732 = vmatprep.subr.bf16.mxu1 %v3092_v33  ;;  %v3154_v33 = vld [vmem:[%s4870_s1 + $0x224] ss:$8 sps:$4 sm:$0xff]  }
  0x23   :  { %682 = vmatpush2.bf16.msra.mxu0 %v3091_v34  ;;  %v3152_v34 = vld [vmem:[%s4870_s1 + $0x220] ss:$8 sps:$4 sm:$0xff]  }
  0x24   :  { %683 = vmatprep.subr.bf16.mxu0 %v3095_v35  ;;  %733 = vmatpush2.bf16.msra.mxu1 %v3094_v36  ;;  %v3157_v35 = vld [vmem:[%s4870_s1 + $0x214] ss:$8 sps:$4 sm:$0xff]   ;;  %v3155_v36 = vld [vmem:[%s4870_s1 + $0x210] ss:$8 sps:$4 sm:$0xff]  }
  0x25   :  { %734 = vmatprep.subr.bf16.mxu1 %v3098_v37  ;;  %v3160_v37 = vld [vmem:[%s4870_s1 + $0x204] ss:$8 sps:$4 sm:$0xff]  }
  0x27   :  { %684 = vmatpush2.bf16.msra.mxu0 %v3097_v38  ;;  %v3158_v38 = vld [vmem:[%s4870_s1 + $0x200] ss:$8 sps:$4 sm:$0xff]  }
  0x28   :  { %685 = vmatprep.subr.bf16.mxu0 %v3101_v39  ;;  %735 = vmatpush2.bf16.msra.mxu1 %v3100_v40  ;;  %v3163_v39 = vld [vmem:[%s4870_s1 + $0x2f4] ss:$8 sps:$4 sm:$0xff]   ;;  %v3161_v40 = vld [vmem:[%s4870_s1 + $0x2f0] ss:$8 sps:$4 sm:$0xff]  }
  0x29   :  { %736 = vmatprep.subr.bf16.mxu1 %v3104_v41  ;;  %v3166_v41 = vld [vmem:[%s4870_s1 + $0x2e4] ss:$8 sps:$4 sm:$0xff]  }
  0x2b   :  { %686 = vmatpush2.bf16.msra.mxu0 %v3103_v42  ;;  %v3164_v42 = vld [vmem:[%s4870_s1 + $0x2e0] ss:$8 sps:$4 sm:$0xff]  }
  0x2c   :  { %687 = vmatprep.subr.bf16.mxu0 %v3107_v43  ;;  %737 = vmatpush2.bf16.msra.mxu1 %v3106_v44  ;;  %v3169_v43 = vld [vmem:[%s4870_s1 + $0x2d4] ss:$8 sps:$4 sm:$0xff]   ;;  %v3167_v44 = vld [vmem:[%s4870_s1 + $0x2d0] ss:$8 sps:$4 sm:$0xff]  }
  0x2d   :  { %738 = vmatprep.subr.bf16.mxu1 %v3110_v45  ;;  %v3172_v45 = vld [vmem:[%s4870_s1 + $0x2c4] ss:$8 sps:$4 sm:$0xff]  }
  0x2f   :  { %688 = vmatpush2.bf16.msra.mxu0 %v3109_v48  ;;  %v3173_v48 = vld [vmem:[%s4870_s1 + $0x2b0] ss:$8 sps:$4 sm:$0xff]  }
  0x30   :  { %689 = vmatprep.subr.bf16.mxu0 %v3113_v50  ;;  %739 = vmatpush2.bf16.msra.mxu1 %v3112_v51  ;;  %v3176_v50 = vld [vmem:[%s4870_s1 + $0x2a0] ss:$8 sps:$4 sm:$0xff]   ;;  %v3181_v51 = vld [vmem:[%s4870_s1 + $0x294] ss:$8 sps:$4 sm:$0xff]  }
  0x31   :  { %740 = vmatprep.subr.bf16.mxu1 %v3116_v54  ;;  %v3182_v54 = vld [vmem:[%s4870_s1 + $0x280] ss:$8 sps:$4 sm:$0xff]  }
  0x33   :  { %690 = vmatpush2.bf16.msra.mxu0 %v3115_v56  ;;  %v3931_v56 = vld [vmem:[%s4869_s0 + $0x50] sm:$0xff] }
  0x34   :  { %691 = vmatprep.subr.bf16.mxu0 %v3119_v57  ;;  %741 = vmatpush2.bf16.msra.mxu1 %v3118_v58  ;;  %v3936_v57 = vld [vmem:[%s4869_s0 + $0x88] sm:$0xff]  ;;  %v69_v58 = vpack.c.bf16 %v3931_v56, %v3926_v55 }
  0x35   :  { %742 = vmatprep.subr.bf16.mxu1 %v3122_v59  ;;  %v76_v59 = vpack.c.bf16 %v3936_v57, %v3936_v57 }
  0x37   :  { %692 = vmatpush2.bf16.msra.mxu0 %v3121_v60  ;;  %v3945_v60 = vld [vmem:[%s4869_s0 + $0x80] sm:$0xff] }
  0x38   :  { %693 = vmatprep.subr.bf16.mxu0 %v3125_v61  ;;  %743 = vmatpush2.bf16.msra.mxu1 %v3124_v62  ;;  %v75_v61 = vpack.c.bf16 %v3945_v60, %v3945_v60 }
  0x39   :  { %744 = vmatprep.subr.bf16.mxu1 %v3128_v63 }
  0x3b   :  { %694 = vmatpush2.bf16.msra.mxu0 %v3127_v0 }
  0x3c   :  { %695 = vmatprep.subr.bf16.mxu0 %v3131_v2  ;;  %745 = vmatpush2.bf16.msra.mxu1 %v3130_v1 }
  0x3d   :  { %746 = vmatprep.subr.bf16.mxu1 %v3134_v4 }
  0x3f   :  { %696 = vmatpush2.bf16.msra.mxu0 %v3133_v3 }
  0x40   :  { %767 = vmatprep.subr.bf16.mxu0 %v3139_v8  ;;  %747 = vmatpush2.bf16.msra.mxu1 %v3136_v6 }
  0x42   :  { %698 = vmatmul.mubr.bf16.vlgmr.msra.gmra.mxu0 %v65_v11 }
  0x43   :  { %768 = vmatpush1.bf16.msra.mxu0 %v3137_v13  ;;  %707 = vmatprep.mubr.bf16.mxu0 %v72_v14 }
  0x44   :  { %749 = vmatmul.mubr.bf16.vlgmr.msra.gmra.mxu1 %v67_v15  ;;  %769 = vmatprep.subr.bf16.mxu0 %v3142_v16 }
  0x45   :  { %758 = vmatprep.mubr.bf16.mxu1 %v74_v18 }
  0x47   :  { %770 = vmatpush1.bf16.msra.mxu0 %v3140_v19 }
  0x48   :  { %771 = vmatprep.subr.bf16.mxu0 %v3145_v21 }
  0x4a   :  { %708 = vmatmul.mubr.bf16.gmra.mxu0 %v71_v27 }
  0x4b   :  { %772 = vmatpush1.bf16.msra.mxu0 %v3143_v24  ;;  %799 = vmatprep.mubr.bf16.mxu0 %v70_v28 }
  0x4c   :  { %773 = vmatprep.subr.bf16.mxu0 %v3148_v26  ;;  %759 = vmatmul.mubr.bf16.gmra.mxu1 %v73_v29 }
  0x4f   :  { %774 = vmatpush1.bf16.msra.mxu0 %v3146_v30 }
  0x50   :  { %775 = vmatprep.subr.bf16.mxu0 %v3151_v31 }
  0x53   :  { %776 = vmatpush1.bf16.msra.mxu0 %v3149_v32 }
  0x54   :  { %777 = vmatprep.subr.bf16.mxu0 %v3154_v33 }
  0x57   :  { %778 = vmatpush1.bf16.msra.mxu0 %v3152_v34 }
  0x58   :  { %779 = vmatprep.subr.bf16.mxu0 %v3157_v35 }
  0x5b   :  { %780 = vmatpush1.bf16.msra.mxu0 %v3155_v36 }
  0x5c   :  { %781 = vmatprep.subr.bf16.mxu0 %v3160_v37 }
  0x5f   :  { %782 = vmatpush1.bf16.msra.mxu0 %v3158_v38 }
  0x60   :  { %783 = vmatprep.subr.bf16.mxu0 %v3163_v39 }
  0x63   :  { %784 = vmatpush2.bf16.msra.mxu0 %v3161_v40 }
  0x64   :  { %785 = vmatprep.subr.bf16.mxu0 %v3166_v41 }
  0x67   :  { %786 = vmatpush2.bf16.msra.mxu0 %v3164_v42 }
  0x68   :  { %787 = vmatprep.subr.bf16.mxu0 %v3169_v43 }
  0x6b   :  { %788 = vmatpush2.bf16.msra.mxu0 %v3167_v44 }
  0x6c   :  { %789 = vmatprep.subr.bf16.mxu0 %v3172_v45 }
  0x6f   :  { %790 = vmatpush2.bf16.msra.mxu0 %v3170_v46 }
  0x70   :  { %791 = vmatprep.subr.bf16.mxu0 %v3175_v47 }
  0x73   :  { %792 = vmatpush2.bf16.msra.mxu0 %v3173_v48 }
  0x74   :  { %793 = vmatprep.subr.bf16.mxu0 %v3178_v49 }
  0x77   :  { %794 = vmatpush2.bf16.msra.mxu0 %v3176_v50 }
  0x78   :  { %795 = vmatprep.subr.bf16.mxu0 %v3181_v51 }
  0x7b   :  { %796 = vmatpush2.bf16.msra.mxu0 %v3179_v52 }
  0x7c   :  { %797 = vmatprep.subr.bf16.mxu0 %v3184_v53 }
  0x7f   :  { %798 = vmatpush2.bf16.msra.mxu0 %v3182_v54 }
  0x82   :  { %800 = vmatmul.mubr.bf16.vlgmr.msra.gmra.mxu0 %v69_v58 }
  0x83   :  { %809 = vmatprep.mubr.bf16.mxu0 %v76_v59 }
  0x84   :  { %20 = vsyncpa [#allocation6], 0  ;;  %v3185_v62 = vld [vmem:[%s4874_s5 + $0x70] ss:$8 sps:$4 sm:$0xff]   ;;  %v3187_v63 = vld [vmem:[%s4874_s5 + $0x74] ss:$8 sps:$4 sm:$0xff]   ;;  %v175_v53 = vlaneseq }
  0x85   :  { %v3188_v0 = vld [vmem:[%s4874_s5 + $0x170] ss:$8 sps:$4 sm:$0xff]   ;;  %v3190_v1 = vld [vmem:[%s4874_s5 + $0x174] ss:$8 sps:$4 sm:$0xff]   ;;  %v3193_v2 = vld [vmem:[%s4874_s5 + $0x64] ss:$8 sps:$4 sm:$0xff]   ;;  %1654 = vmatprep.subr.bf16.mxu1 %v3187_v63 }
  0x86   :  { %v3196_v3 = vld [vmem:[%s4874_s5 + $0x164] ss:$8 sps:$4 sm:$0xff]   ;;  %1655 = vmatpush1.bf16.msra.mxu1 %v3185_v62  ;;  %1695 = vmatprep.subr.bf16.mxu0 %v3190_v1  ;;  %v3191_v4 = vld [vmem:[%s4874_s5 + $0x60] ss:$8 sps:$4 sm:$0xff]   ;;  %v3199_v6 = vld [vmem:[%s4874_s5 + $0x54] ss:$8 sps:$4 sm:$0xff]  }
  0x87   :  { %1696 = vmatpush1.bf16.msra.mxu0 %v3188_v0  ;;  %1656 = vmatprep.subr.bf16.mxu1 %v3193_v2  ;;  %v3194_v5 = vld [vmem:[%s4874_s5 + $0x160] ss:$8 sps:$4 sm:$0xff]   ;;  %v3202_v7 = vld [vmem:[%s4874_s5 + $0x154] ss:$8 sps:$4 sm:$0xff]   ;;  %v3197_v8 = vld [vmem:[%s4874_s5 + $0x50] ss:$8 sps:$4 sm:$0xff]  }
  0x88   :  { %1697 = vmatprep.subr.bf16.mxu0 %v3196_v3  ;;  %v3200_v10 = vld [vmem:[%s4874_s5 + $0x150] ss:$8 sps:$4 sm:$0xff]   ;;  %v3205_v11 = vld [vmem:[%s4874_s5 + $0x44] ss:$8 sps:$4 sm:$0xff]   ;;  %v3203_v13 = vld [vmem:[%s4874_s5 + $0x40] ss:$8 sps:$4 sm:$0xff]  }
  0x89   :  { %v3208_v12 = vld [vmem:[%s4874_s5 + $0x144] ss:$8 sps:$4 sm:$0xff]   ;;  %v3206_v14 = vld [vmem:[%s4874_s5 + $0x140] ss:$8 sps:$4 sm:$0xff]   ;;  %v3211_v15 = vld [vmem:[%s4874_s5 + $0x34] ss:$8 sps:$4 sm:$0xff]  }
  0x8a   :  { %810 = vmatmul.mubr.bf16.gmra.mxu0 %v75_v61  ;;  %1657 = vmatpush1.bf16.msra.mxu1 %v3191_v4  ;;  %v3214_v16 = vld [vmem:[%s4874_s5 + $0x134] ss:$8 sps:$4 sm:$0xff]   ;;  %v3209_v17 = vld [vmem:[%s4874_s5 + $0x30] ss:$8 sps:$4 sm:$0xff]   ;;  %v3217_v19 = vld [vmem:[%s4874_s5 + $0x24] ss:$8 sps:$4 sm:$0xff]  }
  0x8b   :  { %1698 = vmatpush1.bf16.msra.mxu0 %v3194_v5  ;;  %1658 = vmatprep.subr.bf16.mxu1 %v3199_v6  ;;  %v3212_v18 = vld [vmem:[%s4874_s5 + $0x130] ss:$8 sps:$4 sm:$0xff]   ;;  %v3220_v21 = vld [vmem:[%s4874_s5 + $0x124] ss:$8 sps:$4 sm:$0xff]   ;;  %v3215_v24 = vld [vmem:[%s4874_s5 + $0x20] ss:$8 sps:$4 sm:$0xff]  }
  0x8c   :  { %1699 = vmatprep.subr.bf16.mxu0 %v3202_v7  ;;  %v3218_v26 = vld [vmem:[%s4874_s5 + $0x120] ss:$8 sps:$4 sm:$0xff]   ;;  %v3223_v27 = vld [vmem:[%s4874_s5 + $0x14] ss:$8 sps:$4 sm:$0xff]   ;;  %v3221_v29 = vld [vmem:[%s4874_s5 + $0x10] ss:$8 sps:$4 sm:$0xff]  }
  0x8d   :  { %v3226_v28 = vld [vmem:[%s4874_s5 + $0x114] ss:$8 sps:$4 sm:$0xff]   ;;  %v3224_v30 = vld [vmem:[%s4874_s5 + $0x110] ss:$8 sps:$4 sm:$0xff]   ;;  %v3229_v31 = vld [vmem:[%s4874_s5 + $0x4] ss:$8 sps:$4 sm:$0xff]  }
  0x8e   :  { %1659 = vmatpush1.bf16.msra.mxu1 %v3197_v8  ;;  %v3232_v32 = vld [vmem:[%s4874_s5 + $0x104] ss:$8 sps:$4 sm:$0xff]   ;;  %v3227_v33 = vld [vmem:[%s4874_s5] ss:$8 sps:$4 sm:$0xff]   ;;  %v3235_v35 = vld [vmem:[%s4874_s5 + $0xf4] ss:$8 sps:$4 sm:$0xff]  }
  0x8f   :  { %1700 = vmatpush1.bf16.msra.mxu0 %v3200_v10  ;;  %1660 = vmatprep.subr.bf16.mxu1 %v3205_v11  ;;  %v3230_v34 = vld [vmem:[%s4874_s5 + $0x100] ss:$8 sps:$4 sm:$0xff]   ;;  %v3233_v36 = vld [vmem:[%s4874_s5 + $0xf0] ss:$8 sps:$4 sm:$0xff]   ;;  %v176_v54 = vshrl.u32 %v175_v53, 7  ;;  %vm842_vm0 = vcmask 523264  }
  0x90   :  { %1701 = vmatprep.subr.bf16.mxu0 %v3208_v12  ;;  %v173_v59 = vld [vmem:[%s4871_s2] sm:$0x3]  ;;  %v3236_v53 = vld [vmem:[%s4874_s5 + $0x1f0] ss:$8 sps:$4 sm:$0xff]   ;;  %vm1148_vm1 = vcmask 1041409   ;;  %vm1150_vm2 = vcmask 1042434  }
  0x91   :  { %v4051_v58 = vsub.s32 0, %v176_v54  ;;  %v4056_v61 = vsub.s32 1, %v176_v54  ;;  %v824_v8 = vld [vmem:[%s4872_s3] sm:$0x3]  ;;  %v3241_v54 = vld [vmem:[%s4874_s5 + $0xe4] ss:$8 sps:$4 sm:$0xff]  }
  0x92   :  { %1661 = vmatpush1.bf16.msra.mxu1 %v3203_v13  ;;  %vm1793_vm3 = vcmask 1042432   ;;  %vm1795_vm4 = vcmask 518144   ;;  %s3505_s26 = smov [#allocation5]   ;;  %vm2734_vm5 = vcmask 40960  }
  0x93   :  { %1702 = vmatpush1.bf16.msra.mxu0 %v3206_v14  ;;  %1662 = vmatprep.subr.bf16.mxu1 %v3211_v15  ;;  %v178_v62 = vrot.slane %v173_v59, %v4051_v58  ;;  %v182_v63 = vrot.slane %v173_v59, %v4056_v61  ;;  %v833_v14 = vrot.slane %v824_v8, %v4056_v61  ;;  %v3239_v59 = vld [vmem:[%s4874_s5 + $0xe0] ss:$8 sps:$4 sm:$0xff]   ;;  %s2742_s27 = sshll.u32 %s3505_s26, 4  ;;  %s2743_s27 = int_to_ptr.vmem [resolvable:$true] %s2742_s27 }
  0x94   :  { %1703 = vmatprep.subr.bf16.mxu0 %v3214_v16  ;;  %s3482_s28 = scalar_lea.vmem %s2743_s27, 16  ;;  %s3486_s29 = scalar_lea.vmem %s2743_s27, 32 }
  0x95   :  { %p3483_p0 = scmp.ne.s32.totalorder %s2743_s27, %s3482_s28  ;;  %p3487_p1 = scmp.lt.s32.totalorder %s2743_s27, %s2743_s27 }
  0x96   :  { %1663 = vmatpush1.bf16.msra.mxu1 %v3209_v17  ;;  %v829_v17 = vrot.slane %v824_v8, %v4051_v58  ;;  %v3259_v8 = vld [vmem:[%s4874_s5 + $0xb4] ss:$8 sps:$4 sm:$0xff]   ;;  %p3488_p2 = scmp.lt.s32.totalorder %s3486_s29, %s3482_s28 }
  0x97   :  { %1704 = vmatpush1.bf16.msra.mxu0 %v3212_v18  ;;  %1664 = vmatprep.subr.bf16.mxu1 %v3217_v19 }
  0x98   :  { %1705 = vmatprep.subr.bf16.mxu0 %v3220_v21  ;;  %p3489_p3 = por %p3488_p2, %p3487_p1 }
  0x9a   :  { %1665 = vmatpush1.bf16.msra.mxu1 %v3215_v24  ;;  %p3490_p4 = pnand %p3489_p3, %p3483_p0 }
  0x9b   :  { %1706 = vmatpush1.bf16.msra.mxu0 %v3218_v26  ;;  %1666 = vmatprep.subr.bf16.mxu1 %v3223_v27 }
  0x9c   :  { %1707 = vmatprep.subr.bf16.mxu0 %v3226_v28 }
  0x9e   :  { %1667 = vmatpush1.bf16.msra.mxu1 %v3221_v29 }
  0x9f   :  { %1708 = vmatpush1.bf16.msra.mxu0 %v3224_v30  ;;  %1668 = vmatprep.subr.bf16.mxu1 %v3229_v31 }
  0xa0   :  { %1709 = vmatprep.subr.bf16.mxu0 %v3232_v32 }
  0xa2   :  { %1669 = vmatpush1.bf16.msra.mxu1 %v3227_v33 }
  0xa3   :  { %1710 = vmatpush1.bf16.msra.mxu0 %v3230_v34  ;;  %1670 = vmatprep.subr.bf16.mxu1 %v3235_v35 }
  0xa6   :  { %1671 = vmatpush2.bf16.msra.mxu1 %v3233_v36 }
  0xa7   :  { %1672 = vmatprep.subr.bf16.mxu1 %v3241_v54 }
  0xaa   :  { %1673 = vmatpush2.bf16.msra.mxu1 %v3239_v59 }
 0x102   :  { %v699_v37 = vpop.f32.mrf.mxu0 }
 0x103   :  { %v700_v0 = vadd.f32 %v699_v37, %v178_v62 }
 0x104   :  { %v701_v38 = vpop.f32.mrf.mxu0  ;;  %v750_v39 = vpop.f32.mrf.mxu1 }
 0x105   :  { %v702_v1 = vadd.f32 %v701_v38, %v182_v63  ;;  %v751_v2 = vadd.f32 %v750_v39, %v700_v0  ;;  %v3247_v0 = vld [vmem:[%s4874_s5 + $0xd4] ss:$8 sps:$4 sm:$0xff]  }
 0x106   :  { %v703_v40 = vpop.f32.mrf.mxu0  ;;  %v752_v41 = vpop.f32.mrf.mxu1  ;;  %1674 = vmatprep.subr.bf16.mxu1 %v3247_v0 }
 0x107   :  { %v704_v3 = vadd.f32 %v703_v40, %v178_v62  ;;  %v753_v5 = vadd.f32 %v752_v41, %v702_v1  ;;  %v3245_v1 = vld [vmem:[%s4874_s5 + $0xd0] ss:$8 sps:$4 sm:$0xff]  }
 0x108   :  { %v705_v42 = vpop.f32.mrf.mxu0  ;;  %v754_v43 = vpop.f32.mrf.mxu1  ;;  %1675 = vmatpush2.bf16.msra.mxu1 %v3245_v1 }
 0x109   :  { %v706_v6 = vadd.f32 %v705_v42, %v182_v63  ;;  %v755_v11 = vadd.f32 %v754_v43, %v704_v3  ;;  %v3248_v3 = vld [vmem:[%s4874_s5 + $0x1d0] ss:$8 sps:$4 sm:$0xff]  }
 0x10a   :  { %v756_v44 = vpop.f32.mrf.mxu1  ;;  %v709_v45 = vpop.f32.mrf.mxu0 }
 0x10b   :  { %v710_v12 = vadd.f32 %v709_v45, %v178_v62  ;;  %v757_v18 = vadd.f32 %v756_v44, %v706_v6  ;;  %v3244_v62 = vld [vmem:[%s4874_s5 + $0x1e4] ss:$8 sps:$4 sm:$0xff]  }
 0x10c   :  { %v711_v46 = vpop.f32.mrf.mxu0  ;;  %v760_v47 = vpop.f32.mrf.mxu1  ;;  %v3256_v6 = vld [vmem:[%s4874_s5 + $0x1c4] ss:$8 sps:$4 sm:$0xff]  }
 0x10d   :  { %v712_v19 = vadd.f32 %v711_v46, %v182_v63  ;;  %v761_v27 = vadd.f32 %v760_v47, %v710_v12  ;;  %v3242_v63 = vld [vmem:[%s4874_s5 + $0x1e0] ss:$8 sps:$4 sm:$0xff]   ;;  %v3260_v12 = vld [vmem:[%s4874_s5 + $0x1b0] ss:$8 sps:$4 sm:$0xff]  }
 0x10e   :  { %v713_v48 = vpop.f32.mrf.mxu0  ;;  %v762_v49 = vpop.f32.mrf.mxu1 }
 0x10f   :  { %v763_v33 = vadd.f32 %v762_v49, %v712_v19  ;;  %v3269_v19 = vld [vmem:[%s4874_s5 + $0x90] ss:$8 sps:$4 sm:$0xff]  }
 0x110   :  { %v714_v50 = vpop.f32.mrf.mxu0  ;;  %v764_v51 = vpop.f32.mrf.mxu1 }
 0x112   :  { %v765_v52 = vpop.f32.mrf.mxu1 }
 0x113   :  { %v3238_v52 = vld [vmem:[%s4874_s5 + $0x1f4] ss:$8 sps:$4 sm:$0xff]  }
 0x114   :  { %1711 = vmatprep.subr.bf16.mxu0 %v3238_v52 }
 0x115   :  { %1712 = vmatpush2.bf16.msra.mxu0 %v3236_v53 }
 0x116   :  { %1713 = vmatprep.subr.bf16.mxu0 %v3244_v62 }
 0x119   :  { %1714 = vmatpush2.bf16.msra.mxu0 %v3242_v63 }
 0x142   :  { %v801_v4 = vpop.f32.mrf.mxu0 }
 0x143   :  { %v802_v7 = vadd.f32 %v801_v4, %v751_v2  ;;  %v3250_v2 = vld [vmem:[%s4874_s5 + $0x1d4] ss:$8 sps:$4 sm:$0xff]   ;;  %v3253_v4 = vld [vmem:[%s4874_s5 + $0xc4] ss:$8 sps:$4 sm:$0xff]  }
 0x144   :  { %v803_v10 = vpop.f32.mrf.mxu0  ;;  %1715 = vmatprep.subr.bf16.mxu0 %v3250_v2  ;;  %1676 = vmatprep.subr.bf16.mxu1 %v3253_v4 }
 0x145   :  { %v804_v13 = vadd.f32 %v803_v10, %v753_v5  ;;  %v818_v15 = vmax.f32 %v802_v7, 0.0  ;;  %1716 = vmatpush2.bf16.msra.mxu0 %v3248_v3  ;;  %v3251_v5 = vld [vmem:[%s4874_s5 + $0xc0] ss:$8 sps:$4 sm:$0xff]   ;;  %v3257_v10 = vld [vmem:[%s4874_s5 + $0xb0] ss:$8 sps:$4 sm:$0xff]  }
 0x146   :  { %v805_v16 = vpop.f32.mrf.mxu0  ;;  %v3254_v7 = vld [vmem:[%s4874_s5 + $0x1c0] ss:$8 sps:$4 sm:$0xff]   ;;  %1677 = vmatpush2.bf16.msra.mxu1 %v3251_v5  ;;  %1717 = vmatprep.subr.bf16.mxu0 %v3256_v6 }
 0x147   :  { %v819_v21 = vmax.f32 %v804_v13, 0.0  ;;  %v806_v24 = vadd.f32 %v805_v16, %v755_v11  ;;  %v836_v32 = vmul.f32 %v829_v17, %v818_v15  ;;  %v3262_v11 = vld [vmem:[%s4874_s5 + $0x1b4] ss:$8 sps:$4 sm:$0xff]   ;;  %1678 = vmatprep.subr.bf16.mxu1 %v3259_v8  ;;  %v3265_v13 = vld [vmem:[%s4874_s5 + $0xa4] ss:$8 sps:$4 sm:$0xff]  }
 0x148   :  { %v807_v26 = vpop.f32.mrf.mxu0  ;;  %v3268_v15 = vld [vmem:[%s4874_s5 + $0x1a4] ss:$8 sps:$4 sm:$0xff]   ;;  %v3266_v16 = vld [vmem:[%s4874_s5 + $0x1a0] ss:$8 sps:$4 sm:$0xff]  }
 0x149   :  { %v808_v28 = vadd.f32 %v807_v26, %v757_v18  ;;  %v837_v29 = vmul.f32 %v833_v14, %v819_v21  ;;  %v820_v30 = vmax.f32 %v806_v24, 0.0  ;;  %1718 = vmatpush2.bf16.msra.mxu0 %v3254_v7  ;;  %v3274_v18 = vld [vmem:[%s4874_s5 + $0x194] ss:$8 sps:$4 sm:$0xff]   ;;  %v3272_v21 = vld [vmem:[%s4874_s5 + $0x190] ss:$8 sps:$4 sm:$0xff]   ;;  %v3479_v3 = vld [vmem:[%s4869_s0 + $0x48] sm:$0xff] }
 0x14a   :  { %v811_v31 = vpop.f32.mrf.mxu0  ;;  %1679 = vmatpush2.bf16.msra.mxu1 %v3257_v10  ;;  %1719 = vmatprep.subr.bf16.mxu0 %v3262_v11  ;;  %v3277_v24 = vld [vmem:[%s4874_s5 + $0x84] ss:$8 sps:$4 sm:$0xff]  }
 0x14b   :  { %v821_v34 = vmax.f32 %v808_v28, 0.0  ;;  %v812_v35 = vadd.f32 %v811_v31, %v761_v27  ;;  %v843_v36 = vsel %vm842_vm0, %v837_v29, 0.0  ;;  %v838_v41 = vmul.f32 %v829_v17, %v820_v30  ;;  %1680 = vmatprep.subr.bf16.mxu1 %v3265_v13  ;;  %v3280_v26 = vld [vmem:[%s4874_s5 + $0x184] ss:$8 sps:$4 sm:$0xff]   ;;  %v3275_v27 = vld [vmem:[%s4874_s5 + $0x80] ss:$8 sps:$4 sm:$0xff]  }
 0x14c   :  { %v813_v37 = vpop.f32.mrf.mxu0  ;;  %v844_v38 = vadd.f32 %v843_v36, %v836_v32  ;;  %v3278_v28 = vld [vmem:[%s4874_s5 + $0x180] ss:$8 sps:$4 sm:$0xff]   ;;  %v3283_v29 = vld [vmem:[%s4874_s5 + $0x274] ss:$8 sps:$4 sm:$0xff]   ;;  %v856_v30 = vstv %s4873_s4 }
 0x14d   :  { %v839_v39 = vmul.f32 %v833_v14, %v821_v34  ;;  %v814_v40 = vadd.f32 %v813_v37, %v763_v33  ;;  %v822_v42 = vmax.f32 %v812_v35, 0.0  ;;  %1720 = vmatpush2.bf16.msra.mxu0 %v3260_v12  ;;  %v3473_v33 = vld [vmem:[%s4869_s0] sm:$0xff]  ;;  %v3474_v35 = vld [vmem:[%s4869_s0 + $0x8] sm:$0xff] }
 0x14e   :  { %v815_v43 = vpop.f32.mrf.mxu0  ;;  %845 = vadd.xlane.f32.xlu0 %v844_v38  ;;  %1721 = vmatprep.subr.bf16.mxu0 %v3268_v15 }
 0x14f   :  { %v823_v44 = vmax.f32 %v814_v40, 0.0  ;;  %v847_v45 = vsel %vm842_vm0, %v839_v39, 0.0  ;;  %v840_v49 = vmul.f32 %v829_v17, %v822_v42  ;;  %v3271_v17 = vld [vmem:[%s4874_s5 + $0x94] ss:$8 sps:$4 sm:$0xff]  }
 0x150   :  { %v816_v46 = vpop.f32.mrf.mxu0  ;;  %v848_v47 = vadd.f32 %v847_v45, %v838_v41  ;;  %v3475_v39 = vld [vmem:[%s4869_s0 + $0x18] sm:$0xff] }
 0x151   :  { %v841_v48 = vmul.f32 %v833_v14, %v823_v44  ;;  %v3263_v14 = vld [vmem:[%s4874_s5 + $0xa0] ss:$8 sps:$4 sm:$0xff]   ;;  %1722 = vmatpush2.bf16.msra.mxu0 %v3266_v16 }
 0x152   :  { %849 = vadd.xlane.f32.xlu0 %v848_v47  ;;  %1681 = vmatpush2.bf16.msra.mxu1 %v3263_v14  ;;  %v3480_v14 = vld [vmem:[%s4869_s0 + $0x68] sm:$0xff] }
 0x153   :  { %v851_v50 = vsel %vm842_vm0, %v841_v48, 0.0  ;;  %1682 = vmatprep.subr.bf16.mxu1 %v3271_v17  ;;  %1723 = vmatprep.subr.bf16.mxu0 %v3274_v18 }
 0x154   :  { %v852_v51 = vadd.f32 %v851_v50, %v840_v49  ;;  %v3477_v49 = vld [vmem:[%s4869_s0 + $0x38] sm:$0xff] }
 0x155   :  { %1724 = vmatpush2.bf16.msra.mxu0 %v3272_v21 }
 0x156   :  { %853 = vadd.xlane.f32.xlu1 %v852_v51  ;;  %1683 = vmatpush2.bf16.msra.mxu1 %v3269_v19 }
 0x157   :  { %1684 = vmatprep.subr.bf16.mxu1 %v3277_v24  ;;  %1725 = vmatprep.subr.bf16.mxu0 %v3280_v26 }
 0x159   :  { %1726 = vmatpush2.bf16.msra.mxu0 %v3278_v28 }
 0x15a   :  { %1685 = vmatpush2.bf16.msra.mxu1 %v3275_v27 }
 0x15b   :  { %1736 = vmatprep.subr.bf16.mxu1 %v3283_v29 }
 0x1d7   :  { %v846_v31 = vpop.xlane.xlu0 %845 }
 0x1d8   :  { %v4164_v32 = vadd.f32 %v856_v30, %v846_v31 }
 0x1da   :  { %v860_v34 = vmul.f32 %v3473_v33, %v4164_v32  ;;  %v861_v36 = vmul.f32 %v3474_v35, %v4164_v32  ;;  %v862_v37 = vmul.f32 %v4164_v32, %v3792_v9  ;;  %v863_v40 = vmul.f32 %v3475_v39, %v4164_v32  ;;  %v3476_v9 = vld [vmem:[%s4869_s0 + $0x30] sm:$0xff]  ;;  %v3481_v33 = vld [vmem:[%s4869_s0 + $0x78] sm:$0xff] }
 0x1db   :  { %v850_v38 = vpop.xlane.xlu0 %849  ;;  %v4184_v44 = vmul.f32 %v4164_v32, %v3824_v22  ;;  %v3478_v22 = vld [vmem:[%s4869_s0 + $0x40] sm:$0xff] }
 0x1dc   :  { %v878_v41 = vrot.slane %v860_v34, 4  ;;  %v890_v42 = vrot.slane %v862_v37, 4  ;;  %v4180_v43 = vadd.f32 %v856_v30, %v850_v38  ;;  %v884_v45 = vrot.slane %v861_v36, 4 }
 0x1dd   :  { %v896_v59 = vrot.slane %v863_v40, 4  ;;  %v908_v1 = vrot.slane %v4184_v44, 4 }
 0x1de   :  { %v879_v46 = vadd.f32 %v878_v41, %v860_v34  ;;  %v891_v47 = vadd.f32 %v890_v42, %v862_v37  ;;  %v866_v48 = vmul.f32 %v3476_v9, %v4180_v43  ;;  %v867_v50 = vmul.f32 %v3477_v49, %v4180_v43 }
 0x1df   :  { %v868_v51 = vmul.f32 %v3478_v22, %v4180_v43  ;;  %v854_v52 = vpop.xlane.xlu1 %853  ;;  %v885_v0 = vadd.f32 %v884_v45, %v861_v36  ;;  %v869_v4 = vmul.f32 %v3479_v3, %v4180_v43  ;;  %v4207_v7 = vmul.f32 %v4180_v43, %v3829_v23 }
 0x1e0   :  { %v880_v53 = vrot.slane %v879_v46, 2  ;;  %v914_v54 = vrot.slane %v866_v48, 4  ;;  %v4198_v63 = vadd.f32 %v856_v30, %v854_v52  ;;  %v892_v2 = vrot.slane %v891_v47, 2 }
 0x1e1   :  { %v926_v62 = vrot.slane %v868_v51, 4  ;;  %v920_v6 = vrot.slane %v867_v50, 4  ;;  %v886_v16 = vrot.slane %v885_v0, 2  ;;  %v897_v35 = vadd.f32 %v896_v59, %v863_v40 }
 0x1e2   :  { %v915_v5 = vadd.f32 %v914_v54, %v866_v48  ;;  %v872_v10 = vmul.f32 %v4198_v63, %v3816_v20  ;;  %v874_v11 = vmul.f32 %v4198_v63, %v3837_v25  ;;  %v881_v12 = vadd.f32 %v880_v53, %v879_v46 }
 0x1e3   :  { %v927_v8 = vadd.f32 %v926_v62, %v868_v51  ;;  %v873_v15 = vmul.f32 %v3480_v14, %v4198_v63  ;;  %v921_v19 = vadd.f32 %v920_v6, %v867_v50  ;;  %v4217_v21 = vadd.f32 %v892_v2, %v891_v47 }
 0x1e4   :  { %v916_v13 = vrot.slane %v915_v5, 2  ;;  %v950_v18 = vrot.slane %v872_v10, 4  ;;  %v962_v23 = vrot.slane %v874_v11, 4  ;;  %v887_v20 = vadd.f32 %v886_v16, %v885_v0 }
 0x1e5   :  { %v928_v17 = vrot.slane %v927_v8, 2  ;;  %v956_v26 = vrot.slane %v873_v15, 4  ;;  %v922_v29 = vrot.slane %v921_v19, 2  ;;  %v875_v34 = vmul.f32 %v3481_v33, %v4198_v63 }
 0x1e6   :  { %v917_v24 = vadd.f32 %v916_v13, %v915_v5  ;;  %v951_v25 = vadd.f32 %v950_v18, %v872_v10  ;;  %v4221_v28 = vadd.f32 %v962_v23, %v874_v11  ;;  %v888_v30 = vrot.slane %v887_v20, 1 }
 0x1e7   :  { %v4219_v27 = vadd.f32 %v928_v17, %v927_v8  ;;  %v957_v31 = vadd.f32 %v956_v26, %v873_v15  ;;  %v923_v38 = vadd.f32 %v922_v29, %v921_v19  ;;  %v932_v39 = vrot.slane %v869_v4, 4 }
 0x1e8   :  { %v952_v36 = vrot.slane %v951_v25, 2  ;;  %v964_v37 = vrot.slane %v4221_v28, 2  ;;  %v4228_v41 = vadd.f32 %v888_v30, %v887_v20  ;;  %v898_v45 = vrot.slane %v897_v35, 2 }
 0x1e9   :  { %v958_v42 = vrot.slane %v957_v31, 2  ;;  %v968_v46 = vrot.slane %v875_v34, 4  ;;  %v924_v47 = vrot.slane %v923_v38, 1  ;;  %v933_v9 = vadd.f32 %v932_v39, %v869_v4 }
 0x1ea   :  { %v882_v48 = vrot.slane %v881_v12, 1  ;;  %v918_v49 = vrot.slane %v917_v24, 1  ;;  %v987_v22 = vpack.c.bf16 %v4228_v41, %v4228_v41  ;;  %v899_v40 = vadd.f32 %v898_v45, %v897_v35 }
 0x1eb   :  { %v959_v50 = vadd.f32 %v958_v42, %v957_v31  ;;  %v969_v51 = vadd.f32 %v968_v46, %v875_v34  ;;  %v4232_v52 = vadd.f32 %v924_v47, %v923_v38  ;;  %v934_v53 = vrot.slane %v933_v9, 2 }
 0x1ec   :  { %v4234_v54 = vadd.f32 %v882_v48, %v881_v12  ;;  %v4236_v59 = vadd.f32 %v918_v49, %v917_v24  ;;  %v1131_v0 = vunpack.c.l.b16 %v987_v22  ;;  %v900_v2 = vrot.slane %v899_v40, 1 }
 0x1ed   :  { %v960_v62 = vrot.slane %v959_v50, 1  ;;  %v970_v3 = vrot.slane %v969_v51, 2  ;;  %v993_v4 = vpack.c.bf16 %v4232_v52, %v4232_v52  ;;  %v935_v5 = vadd.f32 %v934_v53, %v933_v9 }
 0x1ee   :  { %v953_v6 = vadd.f32 %v952_v36, %v951_v25  ;;  %v986_v8 = vpack.c.bf16 %v4234_v54, %v4234_v54  ;;  %v4244_v11 = vadd.f32 %v900_v2, %v899_v40  ;;  %v992_v13 = vpack.c.bf16 %v4236_v59, %v4236_v59 }
 0x1ef   :  { %v4242_v10 = vadd.f32 %v960_v62, %v959_v50  ;;  %v971_v12 = vadd.f32 %v970_v3, %v969_v51  ;;  %v1137_v14 = vunpack.c.l.b16 %v993_v4  ;;  %v936_v15 = vrot.slane %v935_v5, 1 }
 0x1f0   :  { %v954_v16 = vrot.slane %v953_v6, 1  ;;  %v1130_v17 = vunpack.c.l.b16 %v986_v8  ;;  %v989_v19 = vpack.c.bf16 %v4244_v11, %v4244_v11  ;;  %v1136_v24 = vunpack.c.l.b16 %v992_v13 }
 0x1f1   :  { %v999_v18 = vpack.c.bf16 %v4242_v10, %v4242_v10  ;;  %v972_v23 = vrot.slane %v971_v12, 1  ;;  %v1152_v20 = vsel %vm1148_vm1, %v1137_v14, %v1131_v0  ;;  %v4253_v26 = vadd.f32 %v936_v15, %v935_v5  ;;  %v3284_v15 = vld [vmem:[%s4874_s5 + $0x260] ss:$8 sps:$4 sm:$0xff]  }
 0x1f2   :  { %v4255_v25 = vadd.f32 %v954_v16, %v953_v6  ;;  %v894_v29 = vrot.slane %v4217_v21, 1  ;;  %v1133_v33 = vunpack.c.l.b16 %v989_v19  ;;  %v1149_v34 = vsel %vm1148_vm1, %v1136_v24, %v1130_v17 }
 0x1f3   :  { %v1143_v30 = vunpack.c.l.b16 %v999_v18  ;;  %v4258_v31 = vadd.f32 %v972_v23, %v971_v12  ;;  %v995_v35 = vpack.c.bf16 %v4253_v26, %v4253_v26  ;;  %v930_v39 = vrot.slane %v4219_v27, 1 }
 0x1f4   :  { %v998_v36 = vpack.c.bf16 %v4255_v25, %v4255_v25  ;;  %v4266_v38 = vadd.f32 %v894_v29, %v4217_v21  ;;  %v965_v46 = vadd.f32 %v964_v37, %v4221_v28  ;;  %v877_v47 = vmul.f32 %v4198_v63, %v3936_v57  ;;  %v3281_v57 = vld [vmem:[%s4874_s5 + $0x270] ss:$8 sps:$4 sm:$0xff]  }
 0x1f5   :  { %v1153_v42 = vsel %vm1150_vm2, %v1143_v30, %v1152_v20  ;;  %v1001_v45 = vpack.c.bf16 %v4258_v31, %v4258_v31  ;;  %v1139_v48 = vunpack.c.l.b16 %v995_v35  ;;  %v4276_v50 = vadd.f32 %v930_v39, %v4219_v27 }
 0x1f6   :  { %v1163_v9 = vpack.c.b16 %v1153_v42, %v1153_v42  ;;  %v1142_v49 = vunpack.c.l.b16 %v998_v36  ;;  %v966_v22 = vrot.slane %v965_v46, 1  ;;  %v988_v40 = vpack.c.bf16 %v4266_v38, %v4266_v38  ;;  %v3292_v36 = vld [vmem:[%s4874_s5 + $0x244] ss:$8 sps:$4 sm:$0xff]  }
 0x1f7   :  { %v1145_v21 = vunpack.c.l.b16 %v1001_v45  ;;  %v909_v51 = vadd.f32 %v908_v1, %v4184_v44  ;;  %v1156_v28 = vsel %vm1148_vm1, %v1139_v48, %v1133_v33  ;;  %v994_v27 = vpack.c.bf16 %v4276_v50, %v4276_v50  ;;  %v3286_v44 = vld [vmem:[%s4874_s5 + $0x264] ss:$8 sps:$4 sm:$0xff]   ;;  %v3295_v48 = vld [vmem:[%s4874_s5 + $0x234] ss:$8 sps:$4 sm:$0xff]  }
 0x1f8   :  { %1686 = vmatprep.mubr.bf16.mxu1 %v1163_v9  ;;  %v1151_v37 = vsel %vm1150_vm2, %v1142_v49, %v1149_v34  ;;  %v944_v53 = vrot.slane %v4207_v7, 4  ;;  %v4292_v2 = vadd.f32 %v966_v22, %v965_v46  ;;  %v980_v8 = vrot.slane %v877_v47, 4  ;;  %v3287_v34 = vld [vmem:[%s4874_s5 + $0x250] ss:$8 sps:$4 sm:$0xff]  }
 0x1f9   :  { %v1157_v62 = vsel %vm1150_vm2, %v1145_v21, %v1156_v28  ;;  %v1162_v0 = vpack.c.b16 %v1151_v37, %v1151_v37  ;;  %v1138_v3 = vunpack.c.l.b16 %v994_v27  ;;  %v910_v4 = vrot.slane %v909_v51, 2  ;;  %v3298_v28 = vld [vmem:[%s4874_s5 + $0x224] ss:$8 sps:$4 sm:$0xff]  }
 0x1fa   :  { %v1165_v1 = vpack.c.b16 %v1157_v62, %v1157_v62  ;;  %v945_v5 = vadd.f32 %v944_v53, %v4207_v7  ;;  %v1000_v6 = vpack.c.bf16 %v4292_v2, %v4292_v2  ;;  %v1132_v12 = vunpack.c.l.b16 %v988_v40  ;;  %v3289_v7 = vld [vmem:[%s4874_s5 + $0x254] ss:$8 sps:$4 sm:$0xff]   ;;  %v3293_v40 = vld [vmem:[%s4874_s5 + $0x230] ss:$8 sps:$4 sm:$0xff]   ;;  %v3296_v53 = vld [vmem:[%s4874_s5 + $0x220] ss:$8 sps:$4 sm:$0xff]  }
 0x1fb   :  { %1687 = vmatmul.mubr.bf16.vlgmr.msra.gmra.mxu1 %v1162_v0  ;;  %v911_v13 = vadd.f32 %v910_v4, %v909_v51  ;;  %v981_v17 = vadd.f32 %v980_v8, %v877_v47  ;;  %v3290_v47 = vld [vmem:[%s4874_s5 + $0x240] ss:$8 sps:$4 sm:$0xff]   ;;  %v3301_v62 = vld [vmem:[%s4874_s5 + $0x214] ss:$8 sps:$4 sm:$0xff]   ;;  %v3299_v0 = vld [vmem:[%s4874_s5 + $0x210] ss:$8 sps:$4 sm:$0xff]   ;;  %v864_v4 = vmul.f32 %v4164_v32, %v3926_v55 }
 0x1fc   :  { %1727 = vmatprep.mubr.bf16.mxu0 %v1165_v1  ;;  %1737 = vmatpush1.bf16.msra.mxu1 %v3281_v57  ;;  %v946_v14 = vrot.slane %v945_v5, 2  ;;  %v1144_v16 = vunpack.c.l.b16 %v1000_v6  ;;  %v1154_v18 = vsel %vm1148_vm1, %v1138_v3, %v1132_v12  ;;  %v3304_v1 = vld [vmem:[%s4874_s5 + $0x204] ss:$8 sps:$4 sm:$0xff]   ;;  %v876_v3 = vmul.f32 %v4198_v63, %v3945_v60  ;;  %v3305_v60 = vld [vmem:[%s4874_s5 + $0x2f0] ss:$8 sps:$4 sm:$0xff]  }
 0x1fd   :  { %1738 = vmatprep.subr.bf16.mxu1 %v3286_v44  ;;  %v912_v23 = vrot.slane %v911_v13, 1  ;;  %v982_v20 = vrot.slane %v981_v17, 2  ;;  %v870_v44 = vmul.f32 %v4180_v43, %v3931_v56  ;;  %v3307_v56 = vld [vmem:[%s4874_s5 + $0x2f4] ss:$8 sps:$4 sm:$0xff]   ;;  %v902_v8 = vrot.slane %v864_v4, 4 }
 0x1fe   :  { %v947_v19 = vadd.f32 %v946_v14, %v945_v5  ;;  %v1155_v24 = vsel %vm1150_vm2, %v1144_v16, %v1154_v18  ;;  %v3302_v5 = vld [vmem:[%s4874_s5 + $0x200] ss:$8 sps:$4 sm:$0xff]   ;;  %v974_v43 = vrot.slane %v876_v3, 4  ;;  %v3310_v55 = vld [vmem:[%s4874_s5 + $0x2e4] ss:$8 sps:$4 sm:$0xff]  }
 0x1ff   :  { %v1164_v29 = vpack.c.b16 %v1155_v24, %v1155_v24  ;;  %v4308_v30 = vadd.f32 %v912_v23, %v911_v13  ;;  %v983_v35 = vadd.f32 %v982_v20, %v981_v17  ;;  %v938_v6 = vrot.slane %v870_v44, 4  ;;  %v3308_v13 = vld [vmem:[%s4874_s5 + $0x2e0] ss:$8 sps:$4 sm:$0xff]   ;;  %v3313_v14 = vld [vmem:[%s4874_s5 + $0x2d4] ss:$8 sps:$4 sm:$0xff]  }
 0x200   :  { %v948_v33 = vrot.slane %v947_v19, 1  ;;  %1739 = vmatpush1.bf16.msra.mxu1 %v3284_v15  ;;  %v975_v32 = vadd.f32 %v974_v43, %v876_v3  ;;  %v903_v12 = vadd.f32 %v902_v8, %v864_v4  ;;  %v3316_v18 = vld [vmem:[%s4874_s5 + $0x2c4] ss:$8 sps:$4 sm:$0xff]   ;;  %v3314_v20 = vld [vmem:[%s4874_s5 + $0x2c0] ss:$8 sps:$4 sm:$0xff]  }
 0x201   :  { %1740 = vmatprep.subr.bf16.mxu1 %v3289_v7  ;;  %1728 = vmatmul.mubr.bf16.vlgmr.msra.gmra.mxu0 %v1164_v29  ;;  %v984_v42 = vrot.slane %v983_v35, 1  ;;  %v991_v45 = vpack.c.bf16 %v4308_v30, %v4308_v30  ;;  %v939_v63 = vadd.f32 %v938_v6, %v870_v44  ;;  %v3311_v7 = vld [vmem:[%s4874_s5 + $0x2d0] ss:$8 sps:$4 sm:$0xff]   ;;  %v3319_v29 = vld [vmem:[%s4874_s5 + $0x2b4] ss:$8 sps:$4 sm:$0xff]  }
 0x202   :  { %v4316_v39 = vadd.f32 %v948_v33, %v947_v19  ;;  %v976_v16 = vrot.slane %v975_v32, 2  ;;  %v904_v17 = vrot.slane %v903_v12, 2  ;;  %v3331_v3 = vld [vmem:[%s4878_s9 + $0x74] ss:$8 sps:$4 sm:$0xff]   ;;  %v3332_v4 = vld [vmem:[%s4878_s9 + $0x170] ss:$8 sps:$4 sm:$0xff]  }
 0x203   :  { %v4325_v9 = vadd.f32 %v984_v42, %v983_v35  ;;  %v1135_v22 = vunpack.c.l.b16 %v991_v45  ;;  %v940_v15 = vrot.slane %v939_v63, 2  ;;  %v3322_v42 = vld [vmem:[%s4874_s5 + $0x2a4] ss:$8 sps:$4 sm:$0xff]   ;;  %2511 = vmatprep.subr.bf16.mxu0 %v3331_v3  ;;  %v3335_v43 = vld [vmem:[%s4878_s9 + $0x60] ss:$8 sps:$4 sm:$0xff]  }
 0x204   :  { %v997_v46 = vpack.c.bf16 %v4316_v39, %v4316_v39  ;;  %1741 = vmatpush1.bf16.msra.mxu1 %v3287_v34  ;;  %v977_v19 = vadd.f32 %v976_v16, %v975_v32  ;;  %v905_v24 = vadd.f32 %v904_v17, %v903_v12  ;;  %v3337_v6 = vld [vmem:[%s4878_s9 + $0x64] ss:$8 sps:$4 sm:$0xff]   ;;  %v3338_v8 = vld [vmem:[%s4878_s9 + $0x160] ss:$8 sps:$4 sm:$0xff]   ;;  %v3344_v32 = vld [vmem:[%s4878_s9 + $0x150] ss:$8 sps:$4 sm:$0xff]  }
 0x205   :  { %1742 = vmatprep.subr.bf16.mxu1 %v3292_v36  ;;  %v1003_v21 = vpack.c.bf16 %v4325_v9, %v4325_v9  ;;  %v941_v23 = vadd.f32 %v940_v15, %v939_v63  ;;  %v3317_v36 = vld [vmem:[%s4874_s5 + $0x2b0] ss:$8 sps:$4 sm:$0xff]   ;;  %v3346_v63 = vld [vmem:[%s4878_s9 + $0x154] ss:$8 sps:$4 sm:$0xff]   ;;  %v3349_v12 = vld [vmem:[%s4878_s9 + $0x44] ss:$8 sps:$4 sm:$0xff]  }
 0x206   :  { %v1141_v49 = vunpack.c.l.b16 %v997_v46  ;;  %v978_v34 = vrot.slane %v977_v19, 1  ;;  %v906_v35 = vrot.slane %v905_v24, 1  ;;  %v3350_v15 = vld [vmem:[%s4878_s9 + $0x140] ss:$8 sps:$4 sm:$0xff]   ;;  %v3355_v16 = vld [vmem:[%s4878_s9 + $0x34] ss:$8 sps:$4 sm:$0xff]  }
 0x207   :  { %v1147_v51 = vunpack.c.l.b16 %v1003_v21  ;;  %v942_v33 = vrot.slane %v941_v23, 1  ;;  %v3358_v17 = vld [vmem:[%s4878_s9 + $0x134] ss:$8 sps:$4 sm:$0xff]  }
 0x208   :  { %1743 = vmatpush1.bf16.msra.mxu1 %v3290_v47  ;;  %v1160_v57 = vsel %vm1148_vm1, %v1141_v49, %v1135_v22  ;;  %v4396_v46 = vadd.f32 %v978_v34, %v977_v19  ;;  %v4398_v47 = vadd.f32 %v906_v35, %v905_v24  ;;  %v3325_v49 = vld [vmem:[%s4874_s5 + $0x294] ss:$8 sps:$4 sm:$0xff]   ;;  %v3364_v19 = vld [vmem:[%s4878_s9 + $0x124] ss:$8 sps:$4 sm:$0xff]   ;;  %v3359_v24 = vld [vmem:[%s4878_s9 + $0x20] ss:$8 sps:$4 sm:$0xff]  }
 0x209   :  { %1744 = vmatprep.subr.bf16.mxu1 %v3295_v48  ;;  %v1161_v37 = vsel %vm1150_vm2, %v1147_v51, %v1160_v57  ;;  %v4394_v45 = vadd.f32 %v942_v33, %v941_v23  ;;  %v3320_v48 = vld [vmem:[%s4874_s5 + $0x2a0] ss:$8 sps:$4 sm:$0xff]   ;;  %v3323_v51 = vld [vmem:[%s4874_s5 + $0x290] ss:$8 sps:$4 sm:$0xff]   ;;  %v3361_v23 = vld [vmem:[%s4878_s9 + $0x24] ss:$8 sps:$4 sm:$0xff]  }
 0x20a   :  { %v1167_v27 = vpack.c.b16 %v1161_v37, %v1161_v37  ;;  %v1002_v22 = vpack.c.bf16 %v4396_v46, %v4396_v46  ;;  %v3370_v33 = vld [vmem:[%s4878_s9 + $0x114] ss:$8 sps:$4 sm:$0xff]   ;;  %v3365_v34 = vld [vmem:[%s4878_s9 + $0x10] ss:$8 sps:$4 sm:$0xff]  }
 0x20b   :  { %v996_v21 = vpack.c.bf16 %v4394_v45, %v4394_v45  ;;  %v3368_v35 = vld [vmem:[%s4878_s9 + $0x110] ss:$8 sps:$4 sm:$0xff]  }
 0x20c   :  { %1745 = vmatpush1.bf16.msra.mxu1 %v3293_v40  ;;  %1768 = vmatprep.mubr.bf16.mxu1 %v1167_v27  ;;  %v990_v40 = vpack.c.bf16 %v4398_v47, %v4398_v47  ;;  %v1146_v37 = vunpack.c.l.b16 %v1002_v22  ;;  %v3382_v22 = vld [vmem:[%s4878_s9 + $0x1f4] ss:$8 sps:$4 sm:$0xff]  }
 0x20d   :  { %1746 = vmatprep.subr.bf16.mxu1 %v3298_v28  ;;  %v3328_v28 = vld [vmem:[%s4874_s5 + $0x284] ss:$8 sps:$4 sm:$0xff]   ;;  %v1140_v57 = vunpack.c.l.b16 %v996_v21  ;;  %v3379_v21 = vld [vmem:[%s4878_s9 + $0xf4] ss:$8 sps:$4 sm:$0xff]  }
 0x20e   :  { %v1134_v27 = vunpack.c.l.b16 %v990_v40  ;;  %v3377_v40 = vld [vmem:[%s4878_s9 + $0xf0] ss:$8 sps:$4 sm:$0xff]  }
 0x210   :  { %1747 = vmatpush1.bf16.msra.mxu1 %v3296_v53  ;;  %v3326_v53 = vld [vmem:[%s4874_s5 + $0x280] ss:$8 sps:$4 sm:$0xff]  }
 0x211   :  { %1748 = vmatprep.subr.bf16.mxu1 %v3301_v62  ;;  %v1158_v62 = vsel %vm1148_vm1, %v1140_v57, %v1134_v27  ;;  %v3388_v57 = vld [vmem:[%s4878_s9 + $0x1e4] ss:$8 sps:$4 sm:$0xff]   ;;  %v3386_v27 = vld [vmem:[%s4878_s9 + $0x1e0] ss:$8 sps:$4 sm:$0xff]  }
 0x214   :  { %1749 = vmatpush1.bf16.msra.mxu1 %v3299_v0  ;;  %v1159_v0 = vsel %vm1150_vm2, %v1146_v37, %v1158_v62  ;;  %v3383_v37 = vld [vmem:[%s4878_s9 + $0xe0] ss:$8 sps:$4 sm:$0xff]  }
 0x215   :  { %1750 = vmatprep.subr.bf16.mxu1 %v3304_v1  ;;  %v1166_v44 = vpack.c.b16 %v1159_v0, %v1159_v0  ;;  %v3329_v1 = vld [vmem:[%s4878_s9 + $0x70] ss:$8 sps:$4 sm:$0xff]  }
 0x216   :  { %2512 = vmatpush1.bf16.msra.mxu0 %v3329_v1 }
 0x217   :  { %2513 = vmatprep.subr.bf16.mxu0 %v3337_v6  ;;  %v1100_v6 = vld [vmem:[%s4875_s6] sm:$0x3] }
 0x218   :  { %1751 = vmatpush1.bf16.msra.mxu1 %v3302_v5  ;;  %v3334_v5 = vld [vmem:[%s4878_s9 + $0x174] ss:$8 sps:$4 sm:$0xff]  }
 0x219   :  { %1752 = vmatprep.subr.bf16.mxu1 %v3307_v56  ;;  %v3340_v56 = vld [vmem:[%s4878_s9 + $0x164] ss:$8 sps:$4 sm:$0xff]  }
 0x21a   :  { %2514 = vmatpush1.bf16.msra.mxu0 %v3335_v43  ;;  %v1109_v43 = vrot.slane %v1100_v6, %v4056_v61 }
 0x21c   :  { %1753 = vmatpush2.bf16.msra.mxu1 %v3305_v60  ;;  %v3343_v60 = vld [vmem:[%s4878_s9 + $0x54] ss:$8 sps:$4 sm:$0xff]  }
 0x21d   :  { %1754 = vmatprep.subr.bf16.mxu1 %v3310_v55  ;;  %v3341_v55 = vld [vmem:[%s4878_s9 + $0x50] ss:$8 sps:$4 sm:$0xff]   ;;  %2515 = vmatprep.subr.bf16.mxu0 %v3343_v60 }
 0x21e   :  { %2516 = vmatpush1.bf16.msra.mxu0 %v3341_v55 }
 0x21f   :  { %2517 = vmatprep.subr.bf16.mxu0 %v3349_v12 }
 0x220   :  { %1755 = vmatpush2.bf16.msra.mxu1 %v3308_v13  ;;  %v3352_v13 = vld [vmem:[%s4878_s9 + $0x144] ss:$8 sps:$4 sm:$0xff]  }
 0x221   :  { %1756 = vmatprep.subr.bf16.mxu1 %v3313_v14  ;;  %v3347_v14 = vld [vmem:[%s4878_s9 + $0x40] ss:$8 sps:$4 sm:$0xff]  }
 0x222   :  { %2518 = vmatpush1.bf16.msra.mxu0 %v3347_v14 }
 0x223   :  { %2519 = vmatprep.subr.bf16.mxu0 %v3355_v16 }
 0x224   :  { %1757 = vmatpush2.bf16.msra.mxu1 %v3311_v7  ;;  %v3353_v7 = vld [vmem:[%s4878_s9 + $0x30] ss:$8 sps:$4 sm:$0xff]  }
 0x225   :  { %1758 = vmatprep.subr.bf16.mxu1 %v3316_v18  ;;  %v3356_v18 = vld [vmem:[%s4878_s9 + $0x130] ss:$8 sps:$4 sm:$0xff]  }
 0x226   :  { %2520 = vmatpush1.bf16.msra.mxu0 %v3353_v7 }
 0x227   :  { %2521 = vmatprep.subr.bf16.mxu0 %v3361_v23 }
 0x228   :  { %1759 = vmatpush2.bf16.msra.mxu1 %v3314_v20  ;;  %v3362_v20 = vld [vmem:[%s4878_s9 + $0x120] ss:$8 sps:$4 sm:$0xff]  }
 0x229   :  { %1760 = vmatprep.subr.bf16.mxu1 %v3319_v29  ;;  %v3367_v29 = vld [vmem:[%s4878_s9 + $0x14] ss:$8 sps:$4 sm:$0xff]  }
 0x22a   :  { %2522 = vmatpush1.bf16.msra.mxu0 %v3359_v24 }
 0x22b   :  { %2523 = vmatprep.subr.bf16.mxu0 %v3367_v29 }
 0x22c   :  { %1761 = vmatpush2.bf16.msra.mxu1 %v3317_v36  ;;  %v3373_v36 = vld [vmem:[%s4878_s9 + $0x4] ss:$8 sps:$4 sm:$0xff]  }
 0x22d   :  { %1762 = vmatprep.subr.bf16.mxu1 %v3322_v42  ;;  %v3376_v42 = vld [vmem:[%s4878_s9 + $0x104] ss:$8 sps:$4 sm:$0xff]  }
 0x22e   :  { %2524 = vmatpush1.bf16.msra.mxu0 %v3365_v34 }
 0x22f   :  { %2525 = vmatprep.subr.bf16.mxu0 %v3373_v36  ;;  %v3391_v36 = vld [vmem:[%s4878_s9 + $0xd4] ss:$8 sps:$4 sm:$0xff]  }
 0x230   :  { %1763 = vmatpush2.bf16.msra.mxu1 %v3320_v48  ;;  %v3371_v48 = vld [vmem:[%s4878_s9] ss:$8 sps:$4 sm:$0xff]  }
 0x231   :  { %1764 = vmatprep.subr.bf16.mxu1 %v3325_v49  ;;  %v3374_v49 = vld [vmem:[%s4878_s9 + $0x100] ss:$8 sps:$4 sm:$0xff]  }
 0x232   :  { %2526 = vmatpush1.bf16.msra.mxu0 %v3371_v48  ;;  %v3394_v48 = vld [vmem:[%s4878_s9 + $0x1d4] ss:$8 sps:$4 sm:$0xff]  }
 0x233   :  { %2527 = vmatprep.subr.bf16.mxu0 %v3379_v21  ;;  %v3400_v21 = vld [vmem:[%s4878_s9 + $0x1c4] ss:$8 sps:$4 sm:$0xff]  }
 0x234   :  { %1765 = vmatpush2.bf16.msra.mxu1 %v3323_v51  ;;  %v3380_v51 = vld [vmem:[%s4878_s9 + $0x1f0] ss:$8 sps:$4 sm:$0xff]  }
 0x235   :  { %1766 = vmatprep.subr.bf16.mxu1 %v3328_v28  ;;  %v3385_v28 = vld [vmem:[%s4878_s9 + $0xe4] ss:$8 sps:$4 sm:$0xff]  }
 0x236   :  { %2528 = vmatpush2.bf16.msra.mxu0 %v3377_v40  ;;  %v3398_v40 = vld [vmem:[%s4878_s9 + $0x1c0] ss:$8 sps:$4 sm:$0xff]  }
 0x237   :  { %2529 = vmatprep.subr.bf16.mxu0 %v3385_v28  ;;  %v3406_v28 = vld [vmem:[%s4878_s9 + $0x1b4] ss:$8 sps:$4 sm:$0xff]  }
 0x238   :  { %1767 = vmatpush2.bf16.msra.mxu1 %v3326_v53 }
 0x239   :  { %2552 = vmatprep.subr.bf16.mxu1 %v3334_v5 }
 0x23a   :  { %2530 = vmatpush2.bf16.msra.mxu0 %v3383_v37  ;;  %v3404_v37 = vld [vmem:[%s4878_s9 + $0x1b0] ss:$8 sps:$4 sm:$0xff]  }
 0x23b   :  { %1769 = vmatmul.mubr.bf16.vlgmr.msra.gmra.mxu1 %v1166_v44  ;;  %2531 = vmatprep.subr.bf16.mxu0 %v3391_v36 }
 0x23c   :  { %2553 = vmatpush1.bf16.msra.mxu1 %v3332_v4 }
 0x23d   :  { %2554 = vmatprep.subr.bf16.mxu1 %v3340_v56  ;;  %v1105_v56 = vrot.slane %v1100_v6, %v4051_v58  ;;  %v3424_v6 = vld [vmem:[%s4878_s9 + $0x184] ss:$8 sps:$4 sm:$0xff]  }
 0x240   :  { %2555 = vmatpush1.bf16.msra.mxu1 %v3338_v8 }
 0x241   :  { %2556 = vmatprep.subr.bf16.mxu1 %v3346_v63  ;;  %v1779_v63 = vld [vmem:[%s4876_s7] sm:$0x3] }
 0x242   :  { %v1784_v14 = vrot.slane %v1779_v63, %v4051_v58  ;;  %v1788_v7 = vrot.slane %v1779_v63, %v4056_v61 }
 0x244   :  { %2557 = vmatpush1.bf16.msra.mxu1 %v3344_v32 }
 0x245   :  { %2558 = vmatprep.subr.bf16.mxu1 %v3352_v13 }
 0x248   :  { %2559 = vmatpush1.bf16.msra.mxu1 %v3350_v15 }
 0x249   :  { %2560 = vmatprep.subr.bf16.mxu1 %v3358_v17 }
 0x24c   :  { %2561 = vmatpush1.bf16.msra.mxu1 %v3356_v18 }
 0x24d   :  { %2562 = vmatprep.subr.bf16.mxu1 %v3364_v19 }
 0x250   :  { %2563 = vmatpush1.bf16.msra.mxu1 %v3362_v20 }
 0x251   :  { %2564 = vmatprep.subr.bf16.mxu1 %v3370_v33 }
 0x254   :  { %2565 = vmatpush1.bf16.msra.mxu1 %v3368_v35  ;;  %v3389_v35 = vld [vmem:[%s4878_s9 + $0xd0] ss:$8 sps:$4 sm:$0xff]  }
 0x255   :  { %2566 = vmatprep.subr.bf16.mxu1 %v3376_v42  ;;  %v3392_v42 = vld [vmem:[%s4878_s9 + $0x1d0] ss:$8 sps:$4 sm:$0xff]   ;;  %2532 = vmatpush2.bf16.msra.mxu0 %v3389_v35 }
 0x258   :  { %2567 = vmatpush1.bf16.msra.mxu1 %v3374_v49  ;;  %v3397_v49 = vld [vmem:[%s4878_s9 + $0xc4] ss:$8 sps:$4 sm:$0xff]  }
 0x259   :  { %2568 = vmatprep.subr.bf16.mxu1 %v3382_v22  ;;  %v3395_v22 = vld [vmem:[%s4878_s9 + $0xc0] ss:$8 sps:$4 sm:$0xff]   ;;  %2533 = vmatprep.subr.bf16.mxu0 %v3397_v49 }
 0x25a   :  { %2534 = vmatpush2.bf16.msra.mxu0 %v3395_v22 }
 0x25c   :  { %2569 = vmatpush2.bf16.msra.mxu1 %v3380_v51  ;;  %v3403_v51 = vld [vmem:[%s4878_s9 + $0xb4] ss:$8 sps:$4 sm:$0xff]  }
 0x25d   :  { %2570 = vmatprep.subr.bf16.mxu1 %v3388_v57  ;;  %v3401_v57 = vld [vmem:[%s4878_s9 + $0xb0] ss:$8 sps:$4 sm:$0xff]   ;;  %2535 = vmatprep.subr.bf16.mxu0 %v3403_v51 }
 0x25e   :  { %2536 = vmatpush2.bf16.msra.mxu0 %v3401_v57 }
 0x260   :  { %2571 = vmatpush2.bf16.msra.mxu1 %v3386_v27  ;;  %v3409_v27 = vld [vmem:[%s4878_s9 + $0xa4] ss:$8 sps:$4 sm:$0xff]  }
 0x261   :  { %2572 = vmatprep.subr.bf16.mxu1 %v3394_v48  ;;  %2537 = vmatprep.subr.bf16.mxu0 %v3409_v27 }
 0x264   :  { %2573 = vmatpush2.bf16.msra.mxu1 %v3392_v42 }
 0x265   :  { %2574 = vmatprep.subr.bf16.mxu1 %v3400_v21 }
 0x268   :  { %2575 = vmatpush2.bf16.msra.mxu1 %v3398_v40 }
 0x269   :  { %2576 = vmatprep.subr.bf16.mxu1 %v3406_v28 }
 0x26c   :  { %2577 = vmatpush2.bf16.msra.mxu1 %v3404_v37 }
 0x2bb   :  { %v1688_v53 = vpop.f32.mrf.mxu1 }
 0x2bc   :  { %v1689_v8 = vadd.f32 %v1688_v53, %v1105_v56  ;;  %v3412_v53 = vld [vmem:[%s4878_s9 + $0x1a4] ss:$8 sps:$4 sm:$0xff]   ;;  %v3419_v56 = vld [vmem:[%s4878_s9 + $0x80] ss:$8 sps:$4 sm:$0xff]  }
 0x2bd   :  { %v1690_v62 = vpop.f32.mrf.mxu1  ;;  %2578 = vmatprep.subr.bf16.mxu1 %v3412_v53 }
 0x2be   :  { %v1691_v60 = vadd.f32 %v1690_v62, %v1109_v43  ;;  %v3407_v62 = vld [vmem:[%s4878_s9 + $0xa0] ss:$8 sps:$4 sm:$0xff]  }
 0x2bf   :  { %v1692_v0 = vpop.f32.mrf.mxu1  ;;  %2538 = vmatpush2.bf16.msra.mxu0 %v3407_v62  ;;  %v3422_v43 = vld [vmem:[%s4878_s9 + $0x180] ss:$8 sps:$4 sm:$0xff]  }
 0x2c0   :  { %v3410_v0 = vld [vmem:[%s4878_s9 + $0x1a0] ss:$8 sps:$4 sm:$0xff]  }
 0x2c1   :  { %v1693_v44 = vpop.f32.mrf.mxu1  ;;  %v1729_v1 = vpop.f32.mrf.mxu0  ;;  %2579 = vmatpush2.bf16.msra.mxu1 %v3410_v0 }
 0x2c2   :  { %v1730_v55 = vadd.f32 %v1729_v1, %v1689_v8  ;;  %v3415_v44 = vld [vmem:[%s4878_s9 + $0x94] ss:$8 sps:$4 sm:$0xff]  }
 0x2c3   :  { %v1731_v3 = vpop.f32.mrf.mxu0  ;;  %v3418_v1 = vld [vmem:[%s4878_s9 + $0x194] ss:$8 sps:$4 sm:$0xff]   ;;  %2539 = vmatprep.subr.bf16.mxu0 %v3415_v44 }
 0x2c4   :  { %v1732_v12 = vadd.f32 %v1731_v3, %v1691_v60  ;;  %v3413_v3 = vld [vmem:[%s4878_s9 + $0x90] ss:$8 sps:$4 sm:$0xff]   ;;  %2580 = vmatprep.subr.bf16.mxu1 %v3418_v1  ;;  %v3427_v8 = vld [vmem:[%s4878_s9 + $0x274] ss:$8 sps:$4 sm:$0xff]   ;;  %v1801_v60 = vstv %s4877_s8 }
 0x2c5   :  { %v1733_v4 = vpop.f32.mrf.mxu0  ;;  %2540 = vmatpush2.bf16.msra.mxu0 %v3413_v3 }
 0x2c6   :  { %v3416_v4 = vld [vmem:[%s4878_s9 + $0x190] ss:$8 sps:$4 sm:$0xff]  }
 0x2c7   :  { %v1734_v5 = vpop.f32.mrf.mxu0  ;;  %2581 = vmatpush2.bf16.msra.mxu1 %v3416_v4 }
 0x2c8   :  { %v3421_v5 = vld [vmem:[%s4878_s9 + $0x84] ss:$8 sps:$4 sm:$0xff]   ;;  %2582 = vmatprep.subr.bf16.mxu1 %v3424_v6 }
 0x2c9   :  { %2541 = vmatprep.subr.bf16.mxu0 %v3421_v5 }
 0x2ca   :  { %2542 = vmatpush2.bf16.msra.mxu0 %v3419_v56 }
 0x2cb   :  { %2583 = vmatpush2.bf16.msra.mxu1 %v3422_v43  ;;  %2593 = vmatprep.subr.bf16.mxu0 %v3427_v8 }
 0x2fb   :  { %v1770_v32 = vpop.f32.mrf.mxu1 }
 0x2fc   :  { %v1771_v13 = vadd.f32 %v1770_v32, %v1730_v55 }
 0x2fd   :  { %v1772_v15 = vpop.f32.mrf.mxu1 }
 0x2fe   :  { %v1777_v16 = vmax.f32 %v1771_v13, 0.0  ;;  %v1773_v17 = vadd.f32 %v1772_v15, %v1732_v12 }
 0x2ff   :  { %v1774_v18 = vpop.f32.mrf.mxu1 }
 0x300   :  { %v1791_v23 = vmul.f32 %v1784_v14, %v1777_v16  ;;  %v1778_v19 = vmax.f32 %v1773_v17, 0.0 }
 0x301   :  { %v1775_v24 = vpop.f32.mrf.mxu1 }
 0x302   :  { %v1792_v20 = vmul.f32 %v1788_v7, %v1778_v19  ;;  %v1794_v29 = vsel %vm1793_vm3, %v1791_v23, 0.0 }
 0x304   :  { %v1796_v33 = vsel %vm1795_vm4, %v1792_v20, 0.0 }
 0x305   :  { %v1797_v34 = vadd.f32 %v1796_v33, %v1794_v29 }
 0x307   :  { %1798 = vadd.xlane.f32.xlu1 %v1797_v34 }
 0x390   :  { %v1799_v63 = vpop.xlane.xlu1 %1798 }
 0x391   :  { %v1802_v55 = vadd.f32 %v1801_v60, %v1799_v63 }
 0x393   :  { %v1804_v32 = vrot.slane %v1802_v55, 1  ;;  %v1805_v12 = vrot.slane %v1802_v55, 2  ;;  %v1810_v13 = vmul.f32 %v1802_v55, %v4228_v41  ;;  %v1812_v14 = vmul.f32 %v1802_v55, %v4244_v11 }
 0x394   :  { %v1809_v15 = vmul.f32 %v1802_v55, %v4234_v54  ;;  %v1811_v16 = vmul.f32 %v1802_v55, %v4266_v38  ;;  %v1814_v17 = vmul.f32 %v1802_v55, %v4308_v30  ;;  %v1813_v4 = vmul.f32 %v1802_v55, %v4398_v47 }
 0x395   :  { %v1816_v7 = vmul.f32 %v1804_v32, %v4232_v52  ;;  %v1822_v18 = vmul.f32 %v1805_v12, %v4242_v10  ;;  %v1818_v23 = vmul.f32 %v1804_v32, %v4253_v26  ;;  %v1824_v19 = vmul.f32 %v1805_v12, %v4258_v31 }
 0x396   :  { %v1815_v24 = vmul.f32 %v1804_v32, %v4236_v59  ;;  %v1821_v41 = vmul.f32 %v1805_v12, %v4255_v25  ;;  %v1817_v11 = vmul.f32 %v1804_v32, %v4276_v50  ;;  %v1823_v54 = vmul.f32 %v1805_v12, %v4292_v2 }
 0x397   :  { %v1849_v20 = vrot.slane %v1816_v7, 7  ;;  %v1851_v38 = vrot.slane %v1822_v18, 6  ;;  %v1857_v29 = vrot.slane %v1818_v23, 7  ;;  %v1859_v30 = vrot.slane %v1824_v19, 6 }
 0x398   :  { %v1845_v33 = vrot.slane %v1815_v24, 7  ;;  %v1847_v52 = vrot.slane %v1821_v41, 6  ;;  %v1853_v34 = vrot.slane %v1817_v11, 7  ;;  %v1855_v10 = vrot.slane %v1823_v54, 6 }
 0x399   :  { %v1850_v26 = vsel %vm1148_vm1, %v1849_v20, %v1810_v13  ;;  %v1858_v31 = vsel %vm1148_vm1, %v1857_v29, %v1812_v14  ;;  %v1820_v59 = vmul.f32 %v1804_v32, %v4316_v39  ;;  %v1826_v25 = vmul.f32 %v1805_v12, %v4325_v9 }
 0x39a   :  { %v1852_v50 = vsel %vm1150_vm2, %v1851_v38, %v1850_v26  ;;  %v1860_v2 = vsel %vm1150_vm2, %v1859_v30, %v1858_v31  ;;  %v1846_v35 = vsel %vm1148_vm1, %v1845_v33, %v1809_v15  ;;  %v1854_v36 = vsel %vm1148_vm1, %v1853_v34, %v1811_v16  ;;  %v3425_v38 = vld [vmem:[%s4878_s9 + $0x270] ss:$8 sps:$4 sm:$0xff]   ;;  %v3428_v26 = vld [vmem:[%s4878_s9 + $0x260] ss:$8 sps:$4 sm:$0xff]   ;;  %v3433_v31 = vld [vmem:[%s4878_s9 + $0x254] ss:$8 sps:$4 sm:$0xff]  }
 0x39b   :  { %v1882_v42 = vsel %vm1793_vm3, %v1852_v50, 0.0  ;;  %v1896_v48 = vsel %vm1793_vm3, %v1860_v2, 0.0  ;;  %v1848_v49 = vsel %vm1150_vm2, %v1847_v52, %v1846_v35  ;;  %v1856_v21 = vsel %vm1150_vm2, %v1855_v10, %v1854_v36  ;;  %v3430_v52 = vld [vmem:[%s4878_s9 + $0x264] ss:$8 sps:$4 sm:$0xff]   ;;  %v3434_v2 = vld [vmem:[%s4878_s9 + $0x240] ss:$8 sps:$4 sm:$0xff]  }
 0x39c   :  { %v1883_v22 = vrot.slane %v1882_v42, 4  ;;  %v1897_v39 = vrot.slane %v1896_v48, 4  ;;  %v1875_v9 = vsel %vm1793_vm3, %v1848_v49, 0.0  ;;  %v1889_v40 = vsel %vm1793_vm3, %v1856_v21, 0.0  ;;  %v3436_v50 = vld [vmem:[%s4878_s9 + $0x244] ss:$8 sps:$4 sm:$0xff]  }
 0x39d   :  { %v1876_v51 = vrot.slane %v1875_v9, 4  ;;  %v1890_v28 = vrot.slane %v1889_v40, 4  ;;  %v1865_v57 = vrot.slane %v1820_v59, 7  ;;  %v1867_v37 = vrot.slane %v1826_v25, 6  ;;  %v3431_v25 = vld [vmem:[%s4878_s9 + $0x250] ss:$8 sps:$4 sm:$0xff]  }
 0x39e   :  { %v1884_v27 = vadd.f32 %v1883_v22, %v1882_v42  ;;  %v1898_v53 = vadd.f32 %v1897_v39, %v1896_v48  ;;  %v1819_v62 = vmul.f32 %v1804_v32, %v4394_v45  ;;  %v1825_v0 = vmul.f32 %v1805_v12, %v4396_v46  ;;  %v3439_v35 = vld [vmem:[%s4878_s9 + $0x234] ss:$8 sps:$4 sm:$0xff]   ;;  %v3437_v36 = vld [vmem:[%s4878_s9 + $0x230] ss:$8 sps:$4 sm:$0xff]   ;;  %v3442_v42 = vld [vmem:[%s4878_s9 + $0x224] ss:$8 sps:$4 sm:$0xff]  }
 0x39f   :  { %v1877_v44 = vadd.f32 %v1876_v51, %v1875_v9  ;;  %v1891_v1 = vadd.f32 %v1890_v28, %v1889_v40  ;;  %v1866_v3 = vsel %vm1148_vm1, %v1865_v57, %v1814_v17  ;;  %v3440_v48 = vld [vmem:[%s4878_s9 + $0x220] ss:$8 sps:$4 sm:$0xff]   ;;  %v3445_v49 = vld [vmem:[%s4878_s9 + $0x214] ss:$8 sps:$4 sm:$0xff]   ;;  %v3443_v21 = vld [vmem:[%s4878_s9 + $0x210] ss:$8 sps:$4 sm:$0xff]  }
 0x3a0   :  { %v1885_v5 = vrot.slane %v1884_v27, 2  ;;  %v1899_v6 = vrot.slane %v1898_v53, 2  ;;  %v1868_v56 = vsel %vm1150_vm2, %v1867_v37, %v1866_v3  ;;  %v1861_v43 = vrot.slane %v1819_v62, 7  ;;  %v3448_v22 = vld [vmem:[%s4878_s9 + $0x204] ss:$8 sps:$4 sm:$0xff]  }
 0x3a1   :  { %v1878_v8 = vrot.slane %v1877_v44, 2  ;;  %v1892_v60 = vrot.slane %v1891_v1, 2  ;;  %v1910_v63 = vsel %vm1793_vm3, %v1868_v56, 0.0  ;;  %v1863_v13 = vrot.slane %v1825_v0, 6  ;;  %v3446_v39 = vld [vmem:[%s4878_s9 + $0x200] ss:$8 sps:$4 sm:$0xff]  }
 0x3a2   :  { %v1886_v14 = vadd.f32 %v1885_v5, %v1884_v27  ;;  %v1900_v45 = vadd.f32 %v1899_v6, %v1898_v53  ;;  %v1911_v32 = vrot.slane %v1910_v63, 4  ;;  %v1862_v46 = vsel %vm1148_vm1, %v1861_v43, %v1813_v4  ;;  %v3451_v9 = vld [vmem:[%s4878_s9 + $0x2f4] ss:$8 sps:$4 sm:$0xff]   ;;  %v3449_v40 = vld [vmem:[%s4878_s9 + $0x2f0] ss:$8 sps:$4 sm:$0xff]  }
 0x3a3   :  { %v1879_v12 = vadd.f32 %v1878_v8, %v1877_v44  ;;  %v1893_v15 = vadd.f32 %v1892_v60, %v1891_v1  ;;  %v1864_v16 = vsel %vm1150_vm2, %v1863_v13, %v1862_v46  ;;  %v3454_v51 = vld [vmem:[%s4878_s9 + $0x2e4] ss:$8 sps:$4 sm:$0xff]   ;;  %v3452_v28 = vld [vmem:[%s4878_s9 + $0x2e0] ss:$8 sps:$4 sm:$0xff]   ;;  %v3457_v57 = vld [vmem:[%s4878_s9 + $0x2d4] ss:$8 sps:$4 sm:$0xff]  }
 0x3a4   :  { %v1887_v47 = vrot.slane %v1886_v14, 1  ;;  %v1901_v55 = vrot.slane %v1900_v45, 1  ;;  %v1912_v17 = vadd.f32 %v1911_v32, %v1910_v63  ;;  %v1903_v37 = vsel %vm1793_vm3, %v1864_v16, 0.0  ;;  %v3455_v27 = vld [vmem:[%s4878_s9 + $0x2d0] ss:$8 sps:$4 sm:$0xff]   ;;  %v2648_v16 = vld [vmem:[%s4880_s11 + $0x60] sm:$0xff] }
 0x3a5   :  { %v1880_v7 = vrot.slane %v1879_v12, 1  ;;  %v1894_v18 = vrot.slane %v1893_v15, 1  ;;  %v3460_v53 = vld [vmem:[%s4878_s9 + $0x2c4] ss:$8 sps:$4 sm:$0xff]   ;;  %v1904_v62 = vrot.slane %v1903_v37, 4  ;;  %v2651_v32 = vld [vmem:[%s4880_s11 + $0x78] sm:$0xff] }
 0x3a6   :  { %v1888_v23 = vadd.f32 %v1887_v47, %v1886_v14  ;;  %v1902_v19 = vadd.f32 %v1901_v55, %v1900_v45  ;;  %v1913_v24 = vrot.slane %v1912_v17, 2  ;;  %v3458_v0 = vld [vmem:[%s4878_s9 + $0x2c0] ss:$8 sps:$4 sm:$0xff]   ;;  %v3463_v44 = vld [vmem:[%s4878_s9 + $0x2b4] ss:$8 sps:$4 sm:$0xff]   ;;  %v3504_v46 = vmov 0.0  }
 0x3a7   :  { %v1881_v41 = vadd.f32 %v1880_v7, %v1879_v12  ;;  %v1895_v11 = vadd.f32 %v1894_v18, %v1893_v15  ;;  %v1905_v1 = vadd.f32 %v1904_v62, %v1903_v37  ;;  %v3461_v3 = vld [vmem:[%s4878_s9 + $0x2b0] ss:$8 sps:$4 sm:$0xff]   ;;  %v3466_v4 = vld [vmem:[%s4878_s9 + $0x2a4] ss:$8 sps:$4 sm:$0xff]   ;;  %v3464_v6 = vld [vmem:[%s4878_s9 + $0x2a0] ss:$8 sps:$4 sm:$0xff]   ;;  %2664 = vmatprep.subr.mxu1 %v3504_v46 }
 0x3a8   :  { %v1918_v54 = vpack.c.bf16 %v1888_v23, %v1888_v23  ;;  %v1920_v20 = vpack.c.bf16 %v1902_v19, %v1902_v19  ;;  %v1914_v29 = vadd.f32 %v1913_v24, %v1912_v17  ;;  %v3469_v56 = vld [vmem:[%s4878_s9 + $0x294] ss:$8 sps:$4 sm:$0xff]   ;;  %v3467_v8 = vld [vmem:[%s4878_s9 + $0x290] ss:$8 sps:$4 sm:$0xff]   ;;  %v3472_v60 = vld [vmem:[%s4878_s9 + $0x284] ss:$8 sps:$4 sm:$0xff]  }
 0x3a9   :  { %v1917_v30 = vpack.c.bf16 %v1881_v41, %v1881_v41  ;;  %v1919_v33 = vpack.c.bf16 %v1895_v11, %v1895_v11  ;;  %v1906_v5 = vrot.slane %v1905_v1, 2  ;;  %v3470_v13 = vld [vmem:[%s4878_s9 + $0x280] ss:$8 sps:$4 sm:$0xff]   ;;  %v2650_v12 = vld [vmem:[%s4880_s11 + $0x70] sm:$0xff]  ;;  %v2647_v47 = vld [vmem:[%s4880_s11 + $0x58] sm:$0xff] }
 0x3aa   :  { %2543 = vmatprep.mubr.bf16.mxu0 %v1918_v54  ;;  %2584 = vmatprep.mubr.bf16.mxu1 %v1920_v20  ;;  %v1915_v34 = vrot.slane %v1914_v29, 1  ;;  %v2649_v15 = vld [vmem:[%s4880_s11 + $0x68] sm:$0xff]  ;;  %v2646_v55 = vld [vmem:[%s4880_s11 + $0x50] sm:$0xff]  ;;  %v2644_v7 = vld [vmem:[%s4880_s11 + $0x40] sm:$0xff] }
 0x3ab   :  { %2544 = vmatmul.mubr.bf16.vlgmr.msra.gmra.mxu0 %v1917_v30  ;;  %2585 = vmatmul.mubr.bf16.vlgmr.msra.gmra.mxu1 %v1919_v33  ;;  %v1907_v43 = vadd.f32 %v1906_v5, %v1905_v1  ;;  %v2645_v17 = vld [vmem:[%s4880_s11 + $0x48] sm:$0xff]  ;;  %v2643_v18 = vld [vmem:[%s4880_s11 + $0x38] sm:$0xff]  ;;  %v2642_v23 = vld [vmem:[%s4880_s11 + $0x30] sm:$0xff] }
 0x3ac   :  { %2594 = vmatpush1.bf16.msra.mxu0 %v3425_v38  ;;  %v1916_v10 = vadd.f32 %v1915_v34, %v1914_v29  ;;  %2665 = vmatpush1.msra.mxu1 %v2651_v32  ;;  %v2641_v19 = vld [vmem:[%s4880_s11 + $0x28] sm:$0xff]  ;;  %v2640_v24 = vld [vmem:[%s4880_s11 + $0x20] sm:$0xff]  ;;  %v2639_v41 = vld [vmem:[%s4880_s11 + $0x18] sm:$0xff] }
 0x3ad   :  { %2595 = vmatprep.subr.bf16.mxu0 %v3430_v52  ;;  %v1908_v63 = vrot.slane %v1907_v43, 1  ;;  %2666 = vmatprep.subr.mxu1 %v3504_v46  ;;  %v2638_v11 = vld [vmem:[%s4880_s11 + $0x10] sm:$0xff]  ;;  %v2637_v54 = vld [vmem:[%s4880_s11 + $0x8] sm:$0xff]  ;;  %v2636_v20 = vld [vmem:[%s4880_s11] sm:$0xff] }
 0x3ae   :  { %v1922_v59 = vpack.c.bf16 %v1916_v10, %v1916_v10  ;;  %2667 = vmatpush1.msra.mxu1 %v2650_v12  ;;  %v2659_v38 = vld [vmem:[%s4880_s11 + $0xb8] sm:$0xff]  ;;  %v2658_v29 = vld [vmem:[%s4880_s11 + $0xb0] sm:$0xff]  ;;  %v2657_v30 = vld [vmem:[%s4880_s11 + $0xa8] sm:$0xff] }
 0x3af   :  { %v1909_v14 = vadd.f32 %v1908_v63, %v1907_v43  ;;  %2668 = vmatprep.subr.mxu1 %v3504_v46  ;;  %v2656_v33 = vld [vmem:[%s4880_s11 + $0xa0] sm:$0xff]  ;;  %v2655_v52 = vld [vmem:[%s4880_s11 + $0x98] sm:$0xff]  ;;  %v2654_v34 = vld [vmem:[%s4880_s11 + $0x90] sm:$0xff] }
 0x3b0   :  { %2625 = vmatprep.mubr.bf16.mxu0 %v1922_v59  ;;  %2596 = vmatpush1.bf16.msra.mxu0 %v3428_v26  ;;  %v2653_v10 = vld [vmem:[%s4880_s11 + $0x88] sm:$0xff]  ;;  %v2652_v26 = vld [vmem:[%s4880_s11 + $0x80] sm:$0xff] }
 0x3b1   :  { %2597 = vmatprep.subr.bf16.mxu0 %v3433_v31  ;;  %v1921_v45 = vpack.c.bf16 %v1909_v14, %v1909_v14  ;;  %2669 = vmatpush1.msra.mxu1 %v2649_v15 }
 0x3b2   :  { %2670 = vmatprep.subr.mxu1 %v3504_v46 }
 0x3b3   :  { %2671 = vmatpush1.msra.mxu1 %v2648_v16 }
 0x3b4   :  { %2598 = vmatpush1.bf16.msra.mxu0 %v3431_v25  ;;  %2672 = vmatprep.subr.mxu1 %v3504_v46 }
 0x3b5   :  { %2599 = vmatprep.subr.bf16.mxu0 %v3436_v50  ;;  %2673 = vmatpush1.msra.mxu1 %v2647_v47 }
 0x3b6   :  { %2674 = vmatprep.subr.mxu1 %v3504_v46 }
 0x3b7   :  { %2675 = vmatpush1.msra.mxu1 %v2646_v55 }
 0x3b8   :  { %2600 = vmatpush1.bf16.msra.mxu0 %v3434_v2  ;;  %2676 = vmatprep.subr.mxu1 %v3504_v46 }
 0x3b9   :  { %2601 = vmatprep.subr.bf16.mxu0 %v3439_v35  ;;  %2677 = vmatpush1.msra.mxu1 %v2645_v17 }
 0x3ba   :  { %2678 = vmatprep.subr.mxu1 %v3504_v46 }
 0x3bb   :  { %2679 = vmatpush1.msra.mxu1 %v2644_v7 }
 0x3bc   :  { %2602 = vmatpush1.bf16.msra.mxu0 %v3437_v36  ;;  %2680 = vmatprep.subr.mxu1 %v3504_v46 }
 0x3bd   :  { %2603 = vmatprep.subr.bf16.mxu0 %v3442_v42  ;;  %2681 = vmatpush1.msra.mxu1 %v2643_v18 }
 0x3be   :  { %2682 = vmatprep.subr.mxu1 %v3504_v46 }
 0x3bf   :  { %2683 = vmatpush1.msra.mxu1 %v2642_v23 }
 0x3c0   :  { %2604 = vmatpush1.bf16.msra.mxu0 %v3440_v48  ;;  %2684 = vmatprep.subr.mxu1 %v3504_v46  ;;  %v2019_v48 = vld [vmem:[%s4879_s10] sm:$0x3] }
 0x3c1   :  { %2605 = vmatprep.subr.bf16.mxu0 %v3445_v49  ;;  %2685 = vmatpush1.msra.mxu1 %v2641_v19  ;;  %v2504_v49 = vrot.slane %v2019_v48, %v4051_v58  ;;  %v2660_v58 = vld [vmem:[%s4881_s12] sm:$0x1] }
 0x3c2   :  { %2686 = vmatprep.subr.mxu1 %v3504_v46 }
 0x3c3   :  { %2687 = vmatpush1.msra.mxu1 %v2640_v24 }
 0x3c4   :  { %2606 = vmatpush1.bf16.msra.mxu0 %v3443_v21  ;;  %2688 = vmatprep.subr.mxu1 %v3504_v46  ;;  %v2508_v21 = vrot.slane %v2019_v48, %v4056_v61 }
 0x3c5   :  { %2607 = vmatprep.subr.bf16.mxu0 %v3448_v22  ;;  %2689 = vmatpush1.msra.mxu1 %v2639_v41 }
 0x3c6   :  { %2690 = vmatprep.subr.mxu1 %v3504_v46 }
 0x3c7   :  { %2691 = vmatpush1.msra.mxu1 %v2638_v11 }
 0x3c8   :  { %2608 = vmatpush1.bf16.msra.mxu0 %v3446_v39  ;;  %2692 = vmatprep.subr.mxu1 %v3504_v46 }
 0x3c9   :  { %2609 = vmatprep.subr.bf16.mxu0 %v3451_v9  ;;  %2693 = vmatpush1.msra.mxu1 %v2637_v54 }
 0x3ca   :  { %2694 = vmatprep.subr.mxu1 %v3504_v46 }
 0x3cb   :  { %2695 = vmatpush1.msra.mxu1 %v2636_v20 }
 0x3cc   :  { %2610 = vmatpush2.bf16.msra.mxu0 %v3449_v40  ;;  %2712 = vmatprep.subr.mxu1 %v3504_v46 }
 0x3cd   :  { %2611 = vmatprep.subr.bf16.mxu0 %v3454_v51  ;;  %2713 = vmatpush2.msra.mxu1 %v2659_v38 }
 0x3ce   :  { %2714 = vmatprep.subr.mxu1 %v3504_v46 }
 0x3cf   :  { %2715 = vmatpush2.msra.mxu1 %v2658_v29 }
 0x3d0   :  { %2612 = vmatpush2.bf16.msra.mxu0 %v3452_v28  ;;  %2716 = vmatprep.subr.mxu1 %v3504_v46 }
 0x3d1   :  { %2613 = vmatprep.subr.bf16.mxu0 %v3457_v57  ;;  %2717 = vmatpush2.msra.mxu1 %v2657_v30 }
 0x3d2   :  { %2718 = vmatprep.subr.mxu1 %v3504_v46 }
 0x3d3   :  { %2719 = vmatpush2.msra.mxu1 %v2656_v33 }
 0x3d4   :  { %2614 = vmatpush2.bf16.msra.mxu0 %v3455_v27  ;;  %2720 = vmatprep.subr.mxu1 %v3504_v46 }
 0x3d5   :  { %2615 = vmatprep.subr.bf16.mxu0 %v3460_v53  ;;  %2721 = vmatpush2.msra.mxu1 %v2655_v52 }
 0x3d6   :  { %2722 = vmatprep.subr.mxu1 %v3504_v46 }
 0x3d7   :  { %2723 = vmatpush2.msra.mxu1 %v2654_v34 }
 0x3d8   :  { %2616 = vmatpush2.bf16.msra.mxu0 %v3458_v0  ;;  %2724 = vmatprep.subr.mxu1 %v3504_v46 }
 0x3d9   :  { %2617 = vmatprep.subr.bf16.mxu0 %v3463_v44  ;;  %2725 = vmatpush2.msra.mxu1 %v2653_v10 }
 0x3da   :  { %2726 = vmatprep.subr.mxu1 %v3504_v46 }
 0x3db   :  { %2727 = vmatpush2.msra.mxu1 %v2652_v26 }
 0x3dc   :  { %2618 = vmatpush2.bf16.msra.mxu0 %v3461_v3 }
 0x3dd   :  { %2619 = vmatprep.subr.bf16.mxu0 %v3466_v4 }
 0x3e0   :  { %2620 = vmatpush2.bf16.msra.mxu0 %v3464_v6 }
 0x3e1   :  { %2621 = vmatprep.subr.bf16.mxu0 %v3469_v56 }
 0x3e4   :  { %2622 = vmatpush2.bf16.msra.mxu0 %v3467_v8 }
 0x3e5   :  { %2623 = vmatprep.subr.bf16.mxu0 %v3472_v60 }
 0x3e8   :  { %2624 = vmatpush2.bf16.msra.mxu0 %v3470_v13 }
 0x3eb   :  { %2626 = vmatmul.mubr.bf16.vlgmr.msra.gmra.mxu0 %v1921_v45 }
 0x46b   :  { %v2545_v31 = vpop.f32.mrf.mxu0  ;;  %v2586_v59 = vpop.f32.mrf.mxu1 }
 0x46c   :  { %v2546_v22 = vadd.f32 %v2545_v31, %v2504_v49 }
 0x46d   :  { %v2547_v25 = vpop.f32.mrf.mxu0  ;;  %v2588_v50 = vpop.f32.mrf.mxu1 }
 0x46e   :  { %v2548_v39 = vadd.f32 %v2547_v25, %v2508_v21  ;;  %v2587_v9 = vadd.f32 %v2586_v59, %v2546_v22 }
 0x46f   :  { %v2549_v2 = vpop.f32.mrf.mxu0  ;;  %v2590_v35 = vpop.f32.mrf.mxu1 }
 0x470   :  { %v2589_v51 = vadd.f32 %v2588_v50, %v2548_v39 }
 0x471   :  { %v2550_v36 = vpop.f32.mrf.mxu0  ;;  %v2591_v42 = vpop.f32.mrf.mxu1 }
 0x4ab   :  { %v2627_v40 = vpop.f32.mrf.mxu0 }
 0x4ac   :  { %v2628_v28 = vadd.f32 %v2627_v40, %v2587_v9 }
 0x4ad   :  { %v2629_v57 = vpop.f32.mrf.mxu0 }
 0x4ae   :  { %v2630_v37 = vadd.f32 %v2629_v57, %v2589_v51  ;;  %v2634_v62 = vmax.f32 %v2628_v28, 0.0 }
 0x4af   :  { %v2631_v27 = vpop.f32.mrf.mxu0 }
 0x4b0   :  { %v2635_v53 = vmax.f32 %v2630_v37, 0.0 }
 0x4b1   :  { %v2632_v0 = vpop.f32.mrf.mxu0 }
 0x4b2   :  { %3038 = vmatprep.mubr.msk.f32.mxu1 %vm842_vm0, %v2635_v53 }
 0x4b3   :  { %2729 = vmatmul.mubr.f32.vlgmr.msra.gmra.mxu1 %v2634_v62 }
 0x573   :  { %v2730_v61 = vpop.f32.mrf.mxu1 }
 0x574   :  { %v2731_v44 = vadd.f32 %v2730_v61, %v2660_v58 }
 0x575   :  { %v2732_v1 = vpop.f32.mrf.mxu1 }
 0x576   :  { %2735 = vst.msk [vmem:[#allocation5] sm:$0x1] %vm2734_vm5, %v2731_v44 }
 0x577   :  { %3493 = shalt.err (!%p3490_p4)
}
 0x578   :  { %2745 = dma.vmem_to_hbm [thread:$0]  %s2743_s27, 16, %s4882_s13, [#allocation6]  }
 0x579   :  { %3502 = dma.done.wait [#allocation6], 16  }
 0x57a   :  { %3503 = vsyncadd [#allocation6], 4294967280 }
 0x57b   :  { %2749 = vsyncpa [#allocation6], 1 }

</bundles_post_ra>
